<compile_context>
chip_gen: v5e
topology: v5e:2x2
jax: 0.10.0
libtpu: 0.0.40
codegen_flags: <defaults>
</compile_context>

<pallas_src>
import jax
import jax.numpy as jnp
from jax.experimental import pallas as pl
from jax.experimental.pallas import tpu as pltpu

EPS_NORM = 1e-12   # torch F.normalize eps
BN_EPS = 1e-5      # torch BatchNorm eps

_C_COORD = 16
_C_KNN = 64
_OUT_PAD = 128     # lane-dense padded output width


# ----------------------------- fused Pallas kernel -----------------------------

def _fused_kernel(rel_ref, ctr_ref, *refs):
    o_ref = refs[-1]
    (m1w1, m1b1, m1w2, m1b2, m1w3, m1b3,
     m2wa, m2wb, m2b1, m2w2, m2b2,
     m3w1, m3b1, m3w2, m3b2, m3w3, m3b3, m3w4, m3b4, m3w5, m3b5) = refs[:-1]

    rel = rel_ref[...]                      # (G*Kp, 3) compute dtype, rel = p - center
    ctr = ctr_ref[...]                      # (G, 3)   compute dtype, raw center point
    GK = rel.shape[0]
    G = ctr.shape[0]
    Kp = GK // G
    cd = m1w2.dtype                         # compute dtype feeding the MXU

    # ---- mlp1: 3 -> 64 -> 128 -> 256 (all on the MXU, fused bias+ReLU+cast) ----
    h = jnp.maximum(
        jnp.dot(rel, m1w1[...], preferred_element_type=jnp.float32) + m1b1[...],
        0.0).astype(cd)                                                  # (GK, 64)
    h = jnp.maximum(
        jnp.dot(h, m1w2[...], preferred_element_type=jnp.float32) + m1b2[...],
        0.0).astype(cd)                                                  # (GK, 128)
    f32_f = (jnp.dot(h, m1w3[...], preferred_element_type=jnp.float32)
             + m1b3[...])                                                # (GK, 256) f32

    # ---- max-pool over K + mlp2 with split weights (no (G,K,512) concat) ----
    # Kp is a multiple of 8, so the f32 (GK,C)<->(G,Kp,C) reshapes are free views.
    mx = jnp.max(f32_f.reshape(G, Kp, 256), axis=1)                      # (G, 256) f32
    f = f32_f.astype(cd)                                                 # (GK, 256)
    h_pool = (jnp.dot(mx.astype(cd), m2wb[...],
                      preferred_element_type=jnp.float32)
              + m2b1[...])                                               # (G, 128) f32
    h2 = jnp.dot(f, m2wa[...], preferred_element_type=jnp.float32)       # (GK, 128) f32
    h2 = jnp.maximum(h2.reshape(G, Kp, 128) + h_pool[:, None, :], 0.0)
    h2 = h2.reshape(GK, 128).astype(cd)
    h3 = (jnp.dot(h2, m2w2[...], preferred_element_type=jnp.float32)
          + m2b2[...])                                                   # (GK, 64) f32
    pooled = jnp.max(h3.reshape(G, Kp, 64), axis=1)                      # (G, 64) f32
    knn = pooled / jnp.maximum(
        jnp.sqrt(jnp.sum(pooled * pooled, axis=-1, keepdims=True)), EPS_NORM)

    # ---- mlp3 on the raw center point: 3 -> 64 -> 128 -> 64 -> 32 -> 16 ----
    c = jnp.maximum(
        jnp.dot(ctr, m3w1[...], preferred_element_type=jnp.float32) + m3b1[...],
        0.0).astype(cd)
    for w_ref, b_ref, relu in ((m3w2, m3b2, True), (m3w3, m3b3, True),
                               (m3w4, m3b4, True), (m3w5, m3b5, False)):
        c = jnp.dot(c, w_ref[...], preferred_element_type=jnp.float32) + b_ref[...]
        if relu:
            c = jnp.maximum(c, 0.0).astype(cd)
    coord = c / jnp.maximum(
        jnp.sqrt(jnp.sum(c * c, axis=-1, keepdims=True)), EPS_NORM)

    # ---- lane-dense 128-wide output slab via static slice stores (no concat) ----
    o_ref[:, 0:_C_COORD] = coord
    o_ref[:, _C_COORD:_C_COORD + _C_KNN] = knn
    o_ref[:, _C_COORD + _C_KNN:] = jnp.zeros(
        (G, _OUT_PAD - _C_COORD - _C_KNN), jnp.float32)


# ----------------------------- wrappers -----------------------------

def _round_up(x, m):
    return ((x + m - 1) // m) * m


def _full_spec(arr):
    nd = arr.ndim
    return pl.BlockSpec(arr.shape, lambda i, _nd=nd: (0,) * _nd)


def _tpu_vmem_capacity_bytes():
    try:
        cap = getattr(pltpu.get_tpu_info(), "vmem_capacity_bytes", None)
        if cap:
            return int(cap)
    except Exception:
        pass
    try:
        kind = jax.devices()[0].device_kind.lower()
        if "v7" in kind or "7x" in kind:
            return 64 * 1024 * 1024
    except Exception:
        pass
    return 128 * 1024 * 1024


def _flatten_params_for_kernel(params, compute_dtype):
    """Split the mlp2 512->128 weight for the concat-free formulation; cast all
    MXU-feeding weights to compute_dtype, keep biases f32 (they add to the f32
    accumulators)."""
    m1, m2, m3 = params["mlp1"], params["mlp2"], params["mlp3"]
    cd = compute_dtype
    w2a, w2b = m2[0][:256], m2[0][256:]
    return [
        m1[0].astype(cd), m1[1], m1[2].astype(cd), m1[3], m1[4].astype(cd), m1[5],
        w2a.astype(cd), w2b.astype(cd), m2[1], m2[2].astype(cd), m2[3],
        m3[0].astype(cd), m3[1], m3[2].astype(cd), m3[3], m3[4].astype(cd), m3[5],
        m3[6].astype(cd), m3[7], m3[8].astype(cd), m3[9],
    ]


def _fused_call(rel_flat, center, params_flat, g, Kp, vmem_limit_bytes):
    bn_pad = center.shape[0]
    grid = bn_pad // g
    # TODO(synk): grid-invariant param blocks are still default double-buffered;
    # could use pipeline_mode=pl.Buffered(1) / a single concatenated slab.
    return pl.pallas_call(
        _fused_kernel,
        out_shape=jax.ShapeDtypeStruct((bn_pad, _OUT_PAD), jnp.float32),
        grid=(grid,),
        in_specs=[pl.BlockSpec((g * Kp, 3), lambda i: (i, 0)),
                  pl.BlockSpec((g, 3), lambda i: (i, 0))]
                 + [_full_spec(a) for a in params_flat],
        out_specs=pl.BlockSpec((g, _OUT_PAD), lambda i: (i, 0)),
        compiler_params=pltpu.CompilerParams(
            dimension_semantics=("parallel",),
            vmem_limit_bytes=vmem_limit_bytes),
    )(rel_flat, center, *params_flat)


def feat_descript(knn_point, params, *, g=None, compute_dtype=jnp.bfloat16):
    # knn_point: (B, N, K, 3) -- the tensor the PyTorch module receives BEFORE
    # its .permute((0,3,1,2)).  Returns hybrid_feature (B, 80, N).
    B, N, K, C = knn_point.shape
    assert C == 3
    BN = B * N
    Kp = _round_up(K, 8)     # pad K so all in-kernel K-axis reshapes are free views

    # ---- generation-aware tiling ----
    cap = _tpu_vmem_capacity_bytes()
    if cap >= 100 * 1024 * 1024:          # v5e / v6e: 128 MiB physical VMEM
        target_rows, vmem_limit = 8192, 80 * 1024 * 1024
    else:                                 # v7x: 64 MiB per TensorCore
        target_rows, vmem_limit = 4096, 44 * 1024 * 1024
    if jnp.dtype(compute_dtype).itemsize >= 4:
        target_rows //= 2                 # f32 activations need extra headroom
    vmem_limit = min(vmem_limit, cap)

    if g is None:
        g = max(8, target_rows // Kp)
    min_steps = 4                         # >=2 pipelined steps per TC on v7x
    g = min(g, max(8, (BN + min_steps - 1) // min_steps))
    g = max(8, _round_up(g, 8))
    bn_pad = _round_up(BN, g)
    if (bn_pad // g) % 2:                 # even grid: clean split across 2 TCs
        bn_pad += g

    # ---- cheap XLA-side prep: center slice/subtract, pad, flatten, cast ----
    x = knn_point.astype(jnp.float32).reshape(BN, K, 3)
    center = x[:, 0, :]                              # (BN, 3)
    rel = x - center[:, None, :]                     # (BN, K, 3)
    if Kp != K:
        # Padded neighbours have rel == 0 == rel of point 0, so max-pools are unchanged.
        rel = jnp.pad(rel, ((0, 0), (0, Kp - K), (0, 0)))
    if bn_pad != BN:
        rel = jnp.pad(rel, ((0, bn_pad - BN), (0, 0), (0, 0)))
        center = jnp.pad(center, ((0, bn_pad - BN), (0, 0)))
    rel_flat = rel.reshape(bn_pad * Kp, 3).astype(compute_dtype)
    center = center.astype(compute_dtype)

    params_flat = _flatten_params_for_kernel(params, compute_dtype)
    out = _fused_call(rel_flat, center, params_flat, g, Kp, vmem_limit)
    hybrid = out[:BN, : _C_COORD + _C_KNN]           # (B*N, 80)
    # TODO(synk): the final (B,N,80)->(B,80,N) relayout stays in XLA; it could be
    # emitted channels-major from the kernel if it ever shows up in the profile.
    return hybrid.reshape(B, N, -1).transpose(0, 2, 1)


# ----------------------------- parameters -----------------------------

def _conv_weight(key, c_in, c_out):
    return jax.random.normal(key, (c_in, c_out), jnp.float32) * (1.0 / jnp.sqrt(c_in))


def _conv_bn_folded(key, c_in, c_out):
    # Conv (no bias) + BatchNorm (eval mode) folded into one (W, b) pair.
    kw, kg, kb, km, kv = jax.random.split(key, 5)
    w = _conv_weight(kw, c_in, c_out)
    gamma = 1.0 + 0.1 * jax.random.normal(kg, (c_out,), jnp.float32)
    beta = 0.1 * jax.random.normal(kb, (c_out,), jnp.float32)
    mean = 0.1 * jax.random.normal(km, (c_out,), jnp.float32)
    var = 0.5 + jax.random.uniform(kv, (c_out,), jnp.float32)
    scale = gamma / jnp.sqrt(var + BN_EPS)
    return [w * scale[None, :], (beta - mean * scale).reshape(1, c_out)]


def _conv_bias(key, c_in, c_out):
    kw, kb = jax.random.split(key)
    return [_conv_weight(kw, c_in, c_out),
            0.05 * jax.random.normal(kb, (1, c_out), jnp.float32)]


def init_params(key):
    keys = jax.random.split(key, 10)
    mlp1 = (_conv_bn_folded(keys[0], 3, 64)
            + _conv_bn_folded(keys[1], 64, 128)
            + _conv_bias(keys[2], 128, 256))
    mlp2 = (_conv_bn_folded(keys[3], 512, 128)
            + _conv_bias(keys[4], 128, 64))
    mlp3 = (_conv_bn_folded(keys[5], 3, 64)
            + _conv_bn_folded(keys[6], 64, 128)
            + _conv_bn_folded(keys[7], 128, 64)
            + _conv_bn_folded(keys[8], 64, 32)
            + _conv_bias(keys[9], 32, 16))
    return {"mlp1": mlp1, "mlp2": mlp2, "mlp3": mlp3}


# ----------------------------- pure-JAX reference -----------------------------

def _chain(x, ws):
    n = len(ws) // 2
    for li in range(n):
        x = x @ ws[2 * li] + ws[2 * li + 1]
        if li < n - 1:
            x = jnp.maximum(x, 0.0)
    return x


def _ref_forward(knn_point, params):
    B, N, K, C = knn_point.shape
    center = knn_point[:, :, 0, :]
    rel = knn_point - center[:, :, None, :]
    f = _chain(rel.reshape(B * N * K, C), params["mlp1"]).reshape(B * N, K, -1)
    mx = jnp.max(f, axis=1, keepdims=True)
    cat = jnp.concatenate([f, jnp.broadcast_to(mx, f.shape)], axis=-1)
    h = _chain(cat.reshape(B * N * K, -1), params["mlp2"]).reshape(B * N, K, -1)
    pooled = jnp.max(h, axis=1)
    knn_feat = pooled / jnp.maximum(jnp.linalg.norm(pooled, axis=-1, keepdims=True), EPS_NORM)
    cf = _chain(center.reshape(B * N, C), params["mlp3"])
    coord = cf / jnp.maximum(jnp.linalg.norm(cf, axis=-1, keepdims=True), EPS_NORM)
    hybrid = jnp.concatenate([coord, knn_feat], axis=-1)
    return hybrid.reshape(B, N, -1).transpose(0, 2, 1)


if __name__ == "__main__":
    key = jax.random.PRNGKey(0)
    kx, kp = jax.random.split(key)
    B, N, K = 2, 16, 8
    knn_point = jax.random.normal(kx, (B, N, K, 3), jnp.float32)
    params = init_params(kp)

    fwd_f32 = jax.jit(lambda x, p: feat_descript(x, p, compute_dtype=jnp.float32))
    fwd_bf16 = jax.jit(lambda x, p: feat_descript(x, p, compute_dtype=jnp.bfloat16))

    ref = _ref_forward(knn_point, params)

    out32 = jax.block_until_ready(fwd_f32(knn_point, params))
    assert out32.shape == (B, 80, N), out32.shape
    assert jnp.allclose(out32, ref, rtol=1e-2, atol=1e-2), float(jnp.max(jnp.abs(out32 - ref)))

    out16 = jax.block_until_ready(fwd_bf16(knn_point, params))
    assert out16.shape == (B, 80, N), out16.shape
    assert jnp.allclose(out16, ref, rtol=5e-2, atol=5e-2), float(jnp.max(jnp.abs(out16 - ref)))

    print("KERNEL_OK")
</pallas_src>

<mosaic_0001>
module attributes {stable_mosaic.version = 11 : i64} {
  func.func @_fused_kernel(%arg0: i32, %arg1: memref<64x3xf32, #tpu.memory_space<vmem>>, %arg2: memref<8x3xf32, #tpu.memory_space<vmem>>, %arg3: memref<3x64xf32, #tpu.memory_space<vmem>>, %arg4: memref<1x64xf32, #tpu.memory_space<vmem>>, %arg5: memref<64x128xf32, #tpu.memory_space<vmem>>, %arg6: memref<1x128xf32, #tpu.memory_space<vmem>>, %arg7: memref<128x256xf32, #tpu.memory_space<vmem>>, %arg8: memref<1x256xf32, #tpu.memory_space<vmem>>, %arg9: memref<256x128xf32, #tpu.memory_space<vmem>>, %arg10: memref<256x128xf32, #tpu.memory_space<vmem>>, %arg11: memref<1x128xf32, #tpu.memory_space<vmem>>, %arg12: memref<128x64xf32, #tpu.memory_space<vmem>>, %arg13: memref<1x64xf32, #tpu.memory_space<vmem>>, %arg14: memref<3x64xf32, #tpu.memory_space<vmem>>, %arg15: memref<1x64xf32, #tpu.memory_space<vmem>>, %arg16: memref<64x128xf32, #tpu.memory_space<vmem>>, %arg17: memref<1x128xf32, #tpu.memory_space<vmem>>, %arg18: memref<128x64xf32, #tpu.memory_space<vmem>>, %arg19: memref<1x64xf32, #tpu.memory_space<vmem>>, %arg20: memref<64x32xf32, #tpu.memory_space<vmem>>, %arg21: memref<1x32xf32, #tpu.memory_space<vmem>>, %arg22: memref<32x16xf32, #tpu.memory_space<vmem>>, %arg23: memref<1x16xf32, #tpu.memory_space<vmem>>, %arg24: memref<8x128xf32, #tpu.memory_space<vmem>>) attributes {dimension_semantics = [#tpu.dimension_semantics<parallel>], iteration_bounds = array<i64: 4>, scalar_prefetch = 0 : i64, scratch_operands = 0 : i64, tpu.core_type = #tpu.core_type<tc>, window_params = [{transform_indices = @transform_0, window_bounds = array<i64: 64, 3>}, {transform_indices = @transform_1, window_bounds = array<i64: 8, 3>}, {pipeline_mode = #tpu.pipeline_mode<synchronous>, transform_indices = @transform_2, window_bounds = array<i64: 3, 64>}, {pipeline_mode = #tpu.pipeline_mode<synchronous>, transform_indices = @transform_3, window_bounds = array<i64: 1, 64>}, {pipeline_mode = #tpu.pipeline_mode<synchronous>, transform_indices = @transform_4, window_bounds = array<i64: 64, 128>}, {pipeline_mode = #tpu.pipeline_mode<synchronous>, transform_indices = @transform_5, window_bounds = array<i64: 1, 128>}, {pipeline_mode = #tpu.pipeline_mode<synchronous>, transform_indices = @transform_6, window_bounds = array<i64: 128, 256>}, {pipeline_mode = #tpu.pipeline_mode<synchronous>, transform_indices = @transform_7, window_bounds = array<i64: 1, 256>}, {pipeline_mode = #tpu.pipeline_mode<synchronous>, transform_indices = @transform_8, window_bounds = array<i64: 256, 128>}, {pipeline_mode = #tpu.pipeline_mode<synchronous>, transform_indices = @transform_9, window_bounds = array<i64: 256, 128>}, {pipeline_mode = #tpu.pipeline_mode<synchronous>, transform_indices = @transform_10, window_bounds = array<i64: 1, 128>}, {pipeline_mode = #tpu.pipeline_mode<synchronous>, transform_indices = @transform_11, window_bounds = array<i64: 128, 64>}, {pipeline_mode = #tpu.pipeline_mode<synchronous>, transform_indices = @transform_12, window_bounds = array<i64: 1, 64>}, {pipeline_mode = #tpu.pipeline_mode<synchronous>, transform_indices = @transform_13, window_bounds = array<i64: 3, 64>}, {pipeline_mode = #tpu.pipeline_mode<synchronous>, transform_indices = @transform_14, window_bounds = array<i64: 1, 64>}, {pipeline_mode = #tpu.pipeline_mode<synchronous>, transform_indices = @transform_15, window_bounds = array<i64: 64, 128>}, {pipeline_mode = #tpu.pipeline_mode<synchronous>, transform_indices = @transform_16, window_bounds = array<i64: 1, 128>}, {pipeline_mode = #tpu.pipeline_mode<synchronous>, transform_indices = @transform_17, window_bounds = array<i64: 128, 64>}, {pipeline_mode = #tpu.pipeline_mode<synchronous>, transform_indices = @transform_18, window_bounds = array<i64: 1, 64>}, {pipeline_mode = #tpu.pipeline_mode<synchronous>, transform_indices = @transform_19, window_bounds = array<i64: 64, 32>}, {pipeline_mode = #tpu.pipeline_mode<synchronous>, transform_indices = @transform_20, window_bounds = array<i64: 1, 32>}, {pipeline_mode = #tpu.pipeline_mode<synchronous>, transform_indices = @transform_21, window_bounds = array<i64: 32, 16>}, {pipeline_mode = #tpu.pipeline_mode<synchronous>, transform_indices = @transform_22, window_bounds = array<i64: 1, 16>}, {transform_indices = @transform_23, window_bounds = array<i64: 8, 128>}]} {
    %c0 = arith.constant 0 : index
    %c0_0 = arith.constant 0 : index
    %0 = vector.load %arg1[%c0, %c0_0] : memref<64x3xf32, #tpu.memory_space<vmem>>, vector<64x3xf32>
    %c0_1 = arith.constant 0 : index
    %c0_2 = arith.constant 0 : index
    %1 = vector.load %arg2[%c0_1, %c0_2] : memref<8x3xf32, #tpu.memory_space<vmem>>, vector<8x3xf32>
    %c0_3 = arith.constant 0 : index
    %c0_4 = arith.constant 0 : index
    %2 = vector.load %arg3[%c0_3, %c0_4] : memref<3x64xf32, #tpu.memory_space<vmem>>, vector<3x64xf32>
    %cst = arith.constant dense<0.000000e+00> : vector<64x64xf32>
    %3 = tpu.matmul %0, %2, %cst {dimension_numbers = #tpu.dot_dimension_numbers<[1], [0], [0], [1], [0, 0, 1, 1], [], []>} : vector<64x3xf32>, vector<3x64xf32>, vector<64x64xf32> -> vector<64x64xf32>
    %c0_5 = arith.constant 0 : index
    %c0_6 = arith.constant 0 : index
    %4 = vector.load %arg4[%c0_5, %c0_6] : memref<1x64xf32, #tpu.memory_space<vmem>>, vector<1x64xf32>
    %5 = vector.broadcast %4 : vector<1x64xf32> to vector<64x64xf32>
    %6 = arith.addf %3, %5 : vector<64x64xf32>
    %cst_7 = arith.constant 0.000000e+00 : f32
    %7 = vector.broadcast %cst_7 : f32 to vector<64x64xf32>
    %8 = arith.maximumf %6, %7 : vector<64x64xf32>
    %c0_8 = arith.constant 0 : index
    %c0_9 = arith.constant 0 : index
    %9 = vector.load %arg5[%c0_8, %c0_9] : memref<64x128xf32, #tpu.memory_space<vmem>>, vector<64x128xf32>
    %cst_10 = arith.constant dense<0.000000e+00> : vector<64x128xf32>
    %10 = tpu.matmul %8, %9, %cst_10 {dimension_numbers = #tpu.dot_dimension_numbers<[1], [0], [0], [1], [0, 0, 1, 1], [], []>} : vector<64x64xf32>, vector<64x128xf32>, vector<64x128xf32> -> vector<64x128xf32>
    %c0_11 = arith.constant 0 : index
    %c0_12 = arith.constant 0 : index
    %11 = vector.load %arg6[%c0_11, %c0_12] : memref<1x128xf32, #tpu.memory_space<vmem>>, vector<1x128xf32>
    %12 = vector.broadcast %11 : vector<1x128xf32> to vector<64x128xf32>
    %13 = arith.addf %10, %12 : vector<64x128xf32>
    %cst_13 = arith.constant 0.000000e+00 : f32
    %14 = vector.broadcast %cst_13 : f32 to vector<64x128xf32>
    %15 = arith.maximumf %13, %14 : vector<64x128xf32>
    %c0_14 = arith.constant 0 : index
    %c0_15 = arith.constant 0 : index
    %16 = vector.load %arg7[%c0_14, %c0_15] : memref<128x256xf32, #tpu.memory_space<vmem>>, vector<128x256xf32>
    %cst_16 = arith.constant dense<0.000000e+00> : vector<64x256xf32>
    %17 = tpu.matmul %15, %16, %cst_16 {dimension_numbers = #tpu.dot_dimension_numbers<[1], [0], [0], [1], [0, 0, 1, 1], [], []>} : vector<64x128xf32>, vector<128x256xf32>, vector<64x256xf32> -> vector<64x256xf32>
    %c0_17 = arith.constant 0 : index
    %c0_18 = arith.constant 0 : index
    %18 = vector.load %arg8[%c0_17, %c0_18] : memref<1x256xf32, #tpu.memory_space<vmem>>, vector<1x256xf32>
    %19 = vector.broadcast %18 : vector<1x256xf32> to vector<64x256xf32>
    %20 = arith.addf %17, %19 : vector<64x256xf32>
    %21 = vector.shape_cast %20 : vector<64x256xf32> to vector<8x8x256xf32>
    %cst_19 = arith.constant dense<0xFF800000> : vector<8x256xf32>
    %22 = vector.multi_reduction <maximumf>, %21, %cst_19 [1] : vector<8x8x256xf32> to vector<8x256xf32>
    %c0_20 = arith.constant 0 : index
    %c0_21 = arith.constant 0 : index
    %23 = vector.load %arg10[%c0_20, %c0_21] : memref<256x128xf32, #tpu.memory_space<vmem>>, vector<256x128xf32>
    %cst_22 = arith.constant dense<0.000000e+00> : vector<8x128xf32>
    %24 = tpu.matmul %22, %23, %cst_22 {dimension_numbers = #tpu.dot_dimension_numbers<[1], [0], [0], [1], [0, 0, 1, 1], [], []>} : vector<8x256xf32>, vector<256x128xf32>, vector<8x128xf32> -> vector<8x128xf32>
    %c0_23 = arith.constant 0 : index
    %c0_24 = arith.constant 0 : index
    %25 = vector.load %arg11[%c0_23, %c0_24] : memref<1x128xf32, #tpu.memory_space<vmem>>, vector<1x128xf32>
    %26 = vector.broadcast %25 : vector<1x128xf32> to vector<8x128xf32>
    %27 = arith.addf %24, %26 : vector<8x128xf32>
    %c0_25 = arith.constant 0 : index
    %c0_26 = arith.constant 0 : index
    %28 = vector.load %arg9[%c0_25, %c0_26] : memref<256x128xf32, #tpu.memory_space<vmem>>, vector<256x128xf32>
    %cst_27 = arith.constant dense<0.000000e+00> : vector<64x128xf32>
    %29 = tpu.matmul %20, %28, %cst_27 {dimension_numbers = #tpu.dot_dimension_numbers<[1], [0], [0], [1], [0, 0, 1, 1], [], []>} : vector<64x256xf32>, vector<256x128xf32>, vector<64x128xf32> -> vector<64x128xf32>
    %30 = vector.shape_cast %29 : vector<64x128xf32> to vector<8x8x128xf32>
    %31 = vector.shape_cast %27 : vector<8x128xf32> to vector<8x1x128xf32>
    %32 = vector.broadcast %31 : vector<8x1x128xf32> to vector<8x8x128xf32>
    %33 = arith.addf %30, %32 : vector<8x8x128xf32>
    %cst_28 = arith.constant 0.000000e+00 : f32
    %34 = vector.broadcast %cst_28 : f32 to vector<8x8x128xf32>
    %35 = arith.maximumf %33, %34 : vector<8x8x128xf32>
    %36 = vector.shape_cast %35 : vector<8x8x128xf32> to vector<64x128xf32>
    %c0_29 = arith.constant 0 : index
    %c0_30 = arith.constant 0 : index
    %37 = vector.load %arg12[%c0_29, %c0_30] : memref<128x64xf32, #tpu.memory_space<vmem>>, vector<128x64xf32>
    %cst_31 = arith.constant dense<0.000000e+00> : vector<64x64xf32>
    %38 = tpu.matmul %36, %37, %cst_31 {dimension_numbers = #tpu.dot_dimension_numbers<[1], [0], [0], [1], [0, 0, 1, 1], [], []>} : vector<64x128xf32>, vector<128x64xf32>, vector<64x64xf32> -> vector<64x64xf32>
    %c0_32 = arith.constant 0 : index
    %c0_33 = arith.constant 0 : index
    %39 = vector.load %arg13[%c0_32, %c0_33] : memref<1x64xf32, #tpu.memory_space<vmem>>, vector<1x64xf32>
    %40 = vector.broadcast %39 : vector<1x64xf32> to vector<64x64xf32>
    %41 = arith.addf %38, %40 : vector<64x64xf32>
    %42 = vector.shape_cast %41 : vector<64x64xf32> to vector<8x8x64xf32>
    %cst_34 = arith.constant dense<0xFF800000> : vector<8x64xf32>
    %43 = vector.multi_reduction <maximumf>, %42, %cst_34 [1] : vector<8x8x64xf32> to vector<8x64xf32>
    %44 = arith.mulf %43, %43 : vector<8x64xf32>
    %cst_35 = arith.constant dense<0.000000e+00> : vector<8xf32>
    %45 = vector.multi_reduction <add>, %44, %cst_35 [1] : vector<8x64xf32> to vector<8xf32>
    %46 = vector.shape_cast %45 : vector<8xf32> to vector<8x1xf32>
    %47 = math.sqrt %46 : vector<8x1xf32>
    %cst_36 = arith.constant 9.99999996E-13 : f32
    %48 = vector.broadcast %cst_36 : f32 to vector<8x1xf32>
    %49 = arith.maximumf %47, %48 : vector<8x1xf32>
    %50 = vector.broadcast %49 : vector<8x1xf32> to vector<8x64xf32>
    %51 = arith.divf %43, %50 : vector<8x64xf32>
    %c0_37 = arith.constant 0 : index
    %c0_38 = arith.constant 0 : index
    %52 = vector.load %arg14[%c0_37, %c0_38] : memref<3x64xf32, #tpu.memory_space<vmem>>, vector<3x64xf32>
    %cst_39 = arith.constant dense<0.000000e+00> : vector<8x64xf32>
    %53 = tpu.matmul %1, %52, %cst_39 {dimension_numbers = #tpu.dot_dimension_numbers<[1], [0], [0], [1], [0, 0, 1, 1], [], []>} : vector<8x3xf32>, vector<3x64xf32>, vector<8x64xf32> -> vector<8x64xf32>
    %c0_40 = arith.constant 0 : index
    %c0_41 = arith.constant 0 : index
    %54 = vector.load %arg15[%c0_40, %c0_41] : memref<1x64xf32, #tpu.memory_space<vmem>>, vector<1x64xf32>
    %55 = vector.broadcast %54 : vector<1x64xf32> to vector<8x64xf32>
    %56 = arith.addf %53, %55 : vector<8x64xf32>
    %cst_42 = arith.constant 0.000000e+00 : f32
    %57 = vector.broadcast %cst_42 : f32 to vector<8x64xf32>
    %58 = arith.maximumf %56, %57 : vector<8x64xf32>
    %c0_43 = arith.constant 0 : index
    %c0_44 = arith.constant 0 : index
    %59 = vector.load %arg16[%c0_43, %c0_44] : memref<64x128xf32, #tpu.memory_space<vmem>>, vector<64x128xf32>
    %cst_45 = arith.constant dense<0.000000e+00> : vector<8x128xf32>
    %60 = tpu.matmul %58, %59, %cst_45 {dimension_numbers = #tpu.dot_dimension_numbers<[1], [0], [0], [1], [0, 0, 1, 1], [], []>} : vector<8x64xf32>, vector<64x128xf32>, vector<8x128xf32> -> vector<8x128xf32>
    %c0_46 = arith.constant 0 : index
    %c0_47 = arith.constant 0 : index
    %61 = vector.load %arg17[%c0_46, %c0_47] : memref<1x128xf32, #tpu.memory_space<vmem>>, vector<1x128xf32>
    %62 = vector.broadcast %61 : vector<1x128xf32> to vector<8x128xf32>
    %63 = arith.addf %60, %62 : vector<8x128xf32>
    %cst_48 = arith.constant 0.000000e+00 : f32
    %64 = vector.broadcast %cst_48 : f32 to vector<8x128xf32>
    %65 = arith.maximumf %63, %64 : vector<8x128xf32>
    %c0_49 = arith.constant 0 : index
    %c0_50 = arith.constant 0 : index
    %66 = vector.load %arg18[%c0_49, %c0_50] : memref<128x64xf32, #tpu.memory_space<vmem>>, vector<128x64xf32>
    %cst_51 = arith.constant dense<0.000000e+00> : vector<8x64xf32>
    %67 = tpu.matmul %65, %66, %cst_51 {dimension_numbers = #tpu.dot_dimension_numbers<[1], [0], [0], [1], [0, 0, 1, 1], [], []>} : vector<8x128xf32>, vector<128x64xf32>, vector<8x64xf32> -> vector<8x64xf32>
    %c0_52 = arith.constant 0 : index
    %c0_53 = arith.constant 0 : index
    %68 = vector.load %arg19[%c0_52, %c0_53] : memref<1x64xf32, #tpu.memory_space<vmem>>, vector<1x64xf32>
    %69 = vector.broadcast %68 : vector<1x64xf32> to vector<8x64xf32>
    %70 = arith.addf %67, %69 : vector<8x64xf32>
    %cst_54 = arith.constant 0.000000e+00 : f32
    %71 = vector.broadcast %cst_54 : f32 to vector<8x64xf32>
    %72 = arith.maximumf %70, %71 : vector<8x64xf32>
    %c0_55 = arith.constant 0 : index
    %c0_56 = arith.constant 0 : index
    %73 = vector.load %arg20[%c0_55, %c0_56] : memref<64x32xf32, #tpu.memory_space<vmem>>, vector<64x32xf32>
    %cst_57 = arith.constant dense<0.000000e+00> : vector<8x32xf32>
    %74 = tpu.matmul %72, %73, %cst_57 {dimension_numbers = #tpu.dot_dimension_numbers<[1], [0], [0], [1], [0, 0, 1, 1], [], []>} : vector<8x64xf32>, vector<64x32xf32>, vector<8x32xf32> -> vector<8x32xf32>
    %c0_58 = arith.constant 0 : index
    %c0_59 = arith.constant 0 : index
    %75 = vector.load %arg21[%c0_58, %c0_59] : memref<1x32xf32, #tpu.memory_space<vmem>>, vector<1x32xf32>
    %76 = vector.broadcast %75 : vector<1x32xf32> to vector<8x32xf32>
    %77 = arith.addf %74, %76 : vector<8x32xf32>
    %cst_60 = arith.constant 0.000000e+00 : f32
    %78 = vector.broadcast %cst_60 : f32 to vector<8x32xf32>
    %79 = arith.maximumf %77, %78 : vector<8x32xf32>
    %c0_61 = arith.constant 0 : index
    %c0_62 = arith.constant 0 : index
    %80 = vector.load %arg22[%c0_61, %c0_62] : memref<32x16xf32, #tpu.memory_space<vmem>>, vector<32x16xf32>
    %cst_63 = arith.constant dense<0.000000e+00> : vector<8x16xf32>
    %81 = tpu.matmul %79, %80, %cst_63 {dimension_numbers = #tpu.dot_dimension_numbers<[1], [0], [0], [1], [0, 0, 1, 1], [], []>} : vector<8x32xf32>, vector<32x16xf32>, vector<8x16xf32> -> vector<8x16xf32>
    %c0_64 = arith.constant 0 : index
    %c0_65 = arith.constant 0 : index
    %82 = vector.load %arg23[%c0_64, %c0_65] : memref<1x16xf32, #tpu.memory_space<vmem>>, vector<1x16xf32>
    %83 = vector.broadcast %82 : vector<1x16xf32> to vector<8x16xf32>
    %84 = arith.addf %81, %83 : vector<8x16xf32>
    %85 = arith.mulf %84, %84 : vector<8x16xf32>
    %cst_66 = arith.constant dense<0.000000e+00> : vector<8xf32>
    %86 = vector.multi_reduction <add>, %85, %cst_66 [1] : vector<8x16xf32> to vector<8xf32>
    %87 = vector.shape_cast %86 : vector<8xf32> to vector<8x1xf32>
    %88 = math.sqrt %87 : vector<8x1xf32>
    %cst_67 = arith.constant 9.99999996E-13 : f32
    %89 = vector.broadcast %cst_67 : f32 to vector<8x1xf32>
    %90 = arith.maximumf %88, %89 : vector<8x1xf32>
    %91 = vector.broadcast %90 : vector<8x1xf32> to vector<8x16xf32>
    %92 = arith.divf %84, %91 : vector<8x16xf32>
    %c0_68 = arith.constant 0 : index
    %c0_69 = arith.constant 0 : index
    %93 = vector.load %arg24[%c0_68, %c0_69] : memref<8x128xf32, #tpu.memory_space<vmem>>, vector<8x16xf32>
    tpu.vector_store %arg24[%c0_68, %c0_69], %92 {strides = array<i32>} : memref<8x128xf32, #tpu.memory_space<vmem>>, vector<8x16xf32>,
    %c0_70 = arith.constant 0 : index
    %c16 = arith.constant 16 : index
    %94 = vector.load %arg24[%c0_70, %c16] : memref<8x128xf32, #tpu.memory_space<vmem>>, vector<8x64xf32>
    tpu.vector_store %arg24[%c0_70, %c16], %51 {strides = array<i32>} : memref<8x128xf32, #tpu.memory_space<vmem>>, vector<8x64xf32>,
    %cst_71 = arith.constant 0.000000e+00 : f32
    %95 = vector.broadcast %cst_71 : f32 to vector<8x48xf32>
    %c0_72 = arith.constant 0 : index
    %c80 = arith.constant 80 : index
    %96 = vector.load %arg24[%c0_72, %c80] : memref<8x128xf32, #tpu.memory_space<vmem>>, vector<8x48xf32>
    tpu.vector_store %arg24[%c0_72, %c80], %95 {strides = array<i32>} : memref<8x128xf32, #tpu.memory_space<vmem>>, vector<8x48xf32>,
    return
  }
  func.func @transform_0(%arg0: i32) -> (i32, i32) {
    %c0_i32 = arith.constant 0 : i32
    %c0_i32_0 = arith.constant 0 : i32
    return %arg0, %c0_i32 : i32, i32
  }
  func.func @transform_1(%arg0: i32) -> (i32, i32) {
    %c0_i32 = arith.constant 0 : i32
    %c0_i32_0 = arith.constant 0 : i32
    return %arg0, %c0_i32 : i32, i32
  }
  func.func @transform_2(%arg0: i32) -> (i32, i32) {
    %c0_i32 = arith.constant 0 : i32
    %c0_i32_0 = arith.constant 0 : i32
    %c0_i32_1 = arith.constant 0 : i32
    return %c0_i32, %c0_i32_0 : i32, i32
  }
  func.func @transform_3(%arg0: i32) -> (i32, i32) {
    %c0_i32 = arith.constant 0 : i32
    %c0_i32_0 = arith.constant 0 : i32
    %c0_i32_1 = arith.constant 0 : i32
    return %c0_i32, %c0_i32_0 : i32, i32
  }
  func.func @transform_4(%arg0: i32) -> (i32, i32) {
    %c0_i32 = arith.constant 0 : i32
    %c0_i32_0 = arith.constant 0 : i32
    %c0_i32_1 = arith.constant 0 : i32
    return %c0_i32, %c0_i32_0 : i32, i32
  }
  func.func @transform_5(%arg0: i32) -> (i32, i32) {
    %c0_i32 = arith.constant 0 : i32
    %c0_i32_0 = arith.constant 0 : i32
    %c0_i32_1 = arith.constant 0 : i32
    return %c0_i32, %c0_i32_0 : i32, i32
  }
  func.func @transform_6(%arg0: i32) -> (i32, i32) {
    %c0_i32 = arith.constant 0 : i32
    %c0_i32_0 = arith.constant 0 : i32
    %c0_i32_1 = arith.constant 0 : i32
    return %c0_i32, %c0_i32_0 : i32, i32
  }
  func.func @transform_7(%arg0: i32) -> (i32, i32) {
    %c0_i32 = arith.constant 0 : i32
    %c0_i32_0 = arith.constant 0 : i32
    %c0_i32_1 = arith.constant 0 : i32
    return %c0_i32, %c0_i32_0 : i32, i32
  }
  func.func @transform_8(%arg0: i32) -> (i32, i32) {
    %c0_i32 = arith.constant 0 : i32
    %c0_i32_0 = arith.constant 0 : i32
    %c0_i32_1 = arith.constant 0 : i32
    return %c0_i32, %c0_i32_0 : i32, i32
  }
  func.func @transform_9(%arg0: i32) -> (i32, i32) {
    %c0_i32 = arith.constant 0 : i32
    %c0_i32_0 = arith.constant 0 : i32
    %c0_i32_1 = arith.constant 0 : i32
    return %c0_i32, %c0_i32_0 : i32, i32
  }
  func.func @transform_10(%arg0: i32) -> (i32, i32) {
    %c0_i32 = arith.constant 0 : i32
    %c0_i32_0 = arith.constant 0 : i32
    %c0_i32_1 = arith.constant 0 : i32
    return %c0_i32, %c0_i32_0 : i32, i32
  }
  func.func @transform_11(%arg0: i32) -> (i32, i32) {
    %c0_i32 = arith.constant 0 : i32
    %c0_i32_0 = arith.constant 0 : i32
    %c0_i32_1 = arith.constant 0 : i32
    return %c0_i32, %c0_i32_0 : i32, i32
  }
  func.func @transform_12(%arg0: i32) -> (i32, i32) {
    %c0_i32 = arith.constant 0 : i32
    %c0_i32_0 = arith.constant 0 : i32
    %c0_i32_1 = arith.constant 0 : i32
    return %c0_i32, %c0_i32_0 : i32, i32
  }
  func.func @transform_13(%arg0: i32) -> (i32, i32) {
    %c0_i32 = arith.constant 0 : i32
    %c0_i32_0 = arith.constant 0 : i32
    %c0_i32_1 = arith.constant 0 : i32
    return %c0_i32, %c0_i32_0 : i32, i32
  }
  func.func @transform_14(%arg0: i32) -> (i32, i32) {
    %c0_i32 = arith.constant 0 : i32
    %c0_i32_0 = arith.constant 0 : i32
    %c0_i32_1 = arith.constant 0 : i32
    return %c0_i32, %c0_i32_0 : i32, i32
  }
  func.func @transform_15(%arg0: i32) -> (i32, i32) {
    %c0_i32 = arith.constant 0 : i32
    %c0_i32_0 = arith.constant 0 : i32
    %c0_i32_1 = arith.constant 0 : i32
    return %c0_i32, %c0_i32_0 : i32, i32
  }
  func.func @transform_16(%arg0: i32) -> (i32, i32) {
    %c0_i32 = arith.constant 0 : i32
    %c0_i32_0 = arith.constant 0 : i32
    %c0_i32_1 = arith.constant 0 : i32
    return %c0_i32, %c0_i32_0 : i32, i32
  }
  func.func @transform_17(%arg0: i32) -> (i32, i32) {
    %c0_i32 = arith.constant 0 : i32
    %c0_i32_0 = arith.constant 0 : i32
    %c0_i32_1 = arith.constant 0 : i32
    return %c0_i32, %c0_i32_0 : i32, i32
  }
  func.func @transform_18(%arg0: i32) -> (i32, i32) {
    %c0_i32 = arith.constant 0 : i32
    %c0_i32_0 = arith.constant 0 : i32
    %c0_i32_1 = arith.constant 0 : i32
    return %c0_i32, %c0_i32_0 : i32, i32
  }
  func.func @transform_19(%arg0: i32) -> (i32, i32) {
    %c0_i32 = arith.constant 0 : i32
    %c0_i32_0 = arith.constant 0 : i32
    %c0_i32_1 = arith.constant 0 : i32
    return %c0_i32, %c0_i32_0 : i32, i32
  }
  func.func @transform_20(%arg0: i32) -> (i32, i32) {
    %c0_i32 = arith.constant 0 : i32
    %c0_i32_0 = arith.constant 0 : i32
    %c0_i32_1 = arith.constant 0 : i32
    return %c0_i32, %c0_i32_0 : i32, i32
  }
  func.func @transform_21(%arg0: i32) -> (i32, i32) {
    %c0_i32 = arith.constant 0 : i32
    %c0_i32_0 = arith.constant 0 : i32
    %c0_i32_1 = arith.constant 0 : i32
    return %c0_i32, %c0_i32_0 : i32, i32
  }
  func.func @transform_22(%arg0: i32) -> (i32, i32) {
    %c0_i32 = arith.constant 0 : i32
    %c0_i32_0 = arith.constant 0 : i32
    %c0_i32_1 = arith.constant 0 : i32
    return %c0_i32, %c0_i32_0 : i32, i32
  }
  func.func @transform_23(%arg0: i32) -> (i32, i32) {
    %c0_i32 = arith.constant 0 : i32
    %c0_i32_0 = arith.constant 0 : i32
    return %arg0, %c0_i32 : i32, i32
  }
}

</mosaic_0001>

<bundles_post_ra>
// kernel: _lambda_.1
= control target key start
LH: loop header
LB: loop body
LE: loop exit
PB: predicated region body
PF: predicated region fallthrough
CT: control target
= control target key end

     0   :  { %s3223_s0 = inlined_call_operand.vmem [shape: f32[256,3], index: 0, kind: input, shape index: {}]   ;;  %s3224_s1 = inlined_call_operand.vmem [shape: f32[32,3], index: 1, kind: input, shape index: {}]   ;;  %s3225_s2 = inlined_call_operand.vmem [shape: f32[3,64], index: 2, kind: input, shape index: {}]   ;;  %s3226_s3 = inlined_call_operand.vmem [shape: f32[1,64], index: 3, kind: input, shape index: {}]   ;;  %s3227_s4 = inlined_call_operand.vmem [shape: f32[64,128], index: 4, kind: input, shape index: {}]   ;;  %s3228_s5 = inlined_call_operand.vmem [shape: f32[1,128], index: 5, kind: input, shape index: {}]   ;;  %s3229_s6 = inlined_call_operand.vmem [shape: f32[128,256], index: 6, kind: input, shape index: {}]   ;;  %s3230_s7 = inlined_call_operand.vmem [shape: f32[1,256], index: 7, kind: input, shape index: {}]   ;;  %s3231_s8 = inlined_call_operand.vmem [shape: f32[256,128], index: 8, kind: input, shape index: {}]   ;;  %s3232_s9 = inlined_call_operand.vmem [shape: f32[256,128], index: 9, kind: input, shape index: {}]   ;;  %s3233_s10 = inlined_call_operand.vmem [shape: f32[1,128], index: 10, kind: input, shape index: {}]   ;;  %s3234_s11 = inlined_call_operand.vmem [shape: f32[128,64], index: 11, kind: input, shape index: {}]   ;;  %s3235_s12 = inlined_call_operand.vmem [shape: f32[1,64], index: 12, kind: input, shape index: {}]   ;;  %s3236_s13 = inlined_call_operand.vmem [shape: f32[3,64], index: 13, kind: input, shape index: {}]   ;;  %s3237_s14 = inlined_call_operand.vmem [shape: f32[1,64], index: 14, kind: input, shape index: {}]   ;;  %s3238_s15 = inlined_call_operand.vmem [shape: f32[64,128], index: 15, kind: input, shape index: {}]   ;;  %s3239_s16 = inlined_call_operand.vmem [shape: f32[1,128], index: 16, kind: input, shape index: {}]   ;;  %s3240_s17 = inlined_call_operand.vmem [shape: f32[128,64], index: 17, kind: input, shape index: {}]   ;;  %s3241_s18 = inlined_call_operand.vmem [shape: f32[1,64], index: 18, kind: input, shape index: {}]   ;;  %s3242_s19 = inlined_call_operand.vmem [shape: f32[64,32], index: 19, kind: input, shape index: {}]   ;;  %s3243_s20 = inlined_call_operand.vmem [shape: f32[1,32], index: 20, kind: input, shape index: {}]   ;;  %s3244_s21 = inlined_call_operand.vmem [shape: f32[32,16], index: 21, kind: input, shape index: {}]   ;;  %s3245_s22 = inlined_call_operand.vmem [shape: f32[1,16], index: 22, kind: input, shape index: {}]   ;;  %s3246_s23 = inlined_call_operand.hbm [shape: f32[32,128], index: 23, kind: output, shape index: {}]  }
   0x1   :  { %3264 = sst [smem:[#allocation12_spill]] %s3223_s0 }
   0x2   :  { %3265 = sst [smem:[#allocation13_spill]] %s3224_s1 }
   0x3   :  { %3266 = sst [smem:[#allocation14_spill]] %s3225_s2 }
   0x4   :  { %3267 = sst [smem:[#allocation15_spill]] %s3226_s3 }
   0x5   :  { %3268 = sst [smem:[#allocation16_spill]] %s3227_s4 }
   0x6   :  { %3269 = sst [smem:[#allocation17_spill]] %s3228_s5 }
   0x7   :  { %3270 = sst [smem:[#allocation18_spill]] %s3229_s6 }
   0x8   :  { %3271 = sst [smem:[#allocation19_spill]] %s3230_s7 }
   0x9   :  { %3272 = sst [smem:[#allocation20_spill]] %s3231_s8 }
   0xa   :  { %3273 = sst [smem:[#allocation21_spill]] %s3232_s9 }
   0xb   :  { %28 = vsyncpa [#allocation3], 0 }
   0xc   :  { %30 = vsyncpa [#allocation3 + $0x1], 0  ;;  %s2303_s4 = smov 0   ;;  %s2305_s30 = smov 0  }
   0xd   :  { %s2307_s24 = smov 0   ;;  %s2309_s25 = smov 0  }
   0xe LB: > { %3274 = sst [smem:[#allocation5_spill]] %s2167_s4  ;;  %s2324_s5 = sadd.s32 4294967295, %s2179_s25   ;;  %s2179_s25 = sphi %s2309_s25, %s3318_s25   ;;  %s2175_s24 = sphi %s2307_s24, %s3320_s24   ;;  %s2171_s30 = sphi %s2305_s30, %s3322_s30   ;;  %s2167_s4 = sphi %s2303_s4, %s3321_s4  }
   0xf   : > { %3275 = sst [smem:[#allocation6_spill]] %s2175_s24  ;;  %s2011_s1 = sadd.s32 4294967294, %s2179_s25  }
  0x10   : > { %3276 = sst [smem:[#allocation7_spill]] %s2179_s25  ;;  %s2328_s26 = sadd.s32 1, %s2179_s25  }
  0x11   : > { %3277 = sst [smem:[#allocation8_spill]] %s2328_s26  ;;  %s536_s2 = sadd.s32 1, %s2175_s24 }
  0x12   : > { %s533_s6 = ssub.s32 %s2179_s25, %s2328_s26  ;;  %p546_p0 = scmp.ne.s32.totalorder %s2175_s24, %s2171_s30 }
  0x13   : > { %p534_p1 = scmp.eq.s32.totalorder %s533_s6, 0  ;;  %p547_p2 = scmp.eq.s32.totalorder %s2324_s5, 3 }
  0x14   : > { %p552_p3 = scmp.ne.s32.totalorder %s2171_s30, %s2167_s4  ;;  %p553_p4 = scmp.eq.s32.totalorder %s2011_s1, 3 }
  0x15   : > { %s2339_s27 = scalar_select %p534_p1, %s2175_s24, %s536_s2  }
  0x16   : > { %p2341_p5 = por %p547_p2, %p546_p0  ;;  %p2345_p6 = por %p553_p4, %p552_p3 }
  0x17   : > { %3278 = sst [smem:[#allocation9_spill]] %s2339_s27  ;;  %p2014_p7 = scmp.ge.s32.totalorder %s2179_s25, 1 }
  0x18   : > { %s3279_s7 = scalar_select %p2341_p5, 1, 0 }
  0x19   : > { %s3281_s28 = scalar_select %p2345_p6, 1, 0 }
  0x1a   : > { %3280 = sst [smem:[#allocation10_spill]] %s3279_s7  ;;  %p650_p8 = scmp.lt.s32.totalorder %s2179_s25, 5 }
  0x1b   : > { %3282 = sst [smem:[#allocation11_spill]] %s3281_s28 }
  0x1c   : > { %p651_p9 = pnand %p2014_p7, %p650_p8 }
  0x1d   : > { %s3283_s0 = sld [smem:[#allocation14_spill]] (!%p651_p9)  ;;  %s2355_s1 = sshll.u32 (!%p651_p9), %s2324_s5, 3 }
  0x1e   : > { %654 = sbr.rel (%p651_p9) target bundleno = 1325 (0x52d), region = 112  ;;  %p719_p10 = scmp.lt.s32.totalorder (!%p651_p9), %s2355_s1, 31 }
  0x1f   : > { %s3284_s26 = sld [smem:[#allocation12_spill]] (!%p651_p9)  ;;  %p724_p11 = scmp.lt.s32.totalorder (!%p651_p9), %s2324_s5, 3 }
  0x20   : > { %s3287_s4 = sld [smem:[#allocation18_spill]] (!%p651_p9)  ;;  %s1935_s27 = scalar_lea.hbm (!%p651_p9), %s3246_s23, %s2355_s1 }
  0x21   : > { %s3290_s8 = sld [smem:[#allocation20_spill]] (!%p651_p9) }
  0x22   : > { %s3291_s9 = sld [smem:[#allocation21_spill]] (!%p651_p9) }
  0x23   : > { %v737_v0 = vld [vmem:[%s3283_s0] sm:$0x7]  ;;  %vm767_vm0 = vcmask 1042432   ;;  %s720_s2 = scalar_select %p719_p10, %s2355_s1, 31  ;;  %vm742_vm1 = vcmask 23552   ;;  %vm832_vm2 = vcmask 523264  }
  0x24   : > { %2019 = vmatpush.msk.msra.mxu0 %vm767_vm0, %v737_v0  ;;  %s3285_s0 = sld [smem:[#allocation16_spill]]  ;;  %vm1174_vm3 = vcmask 1041409   ;;  %vm3263_vm4 = vcmask 1042434   ;;  %vm3262_vm5 = vcmask 1043459   ;;  %vm3261_vm6 = vcmask 1044484   ;;  %s3324_s5 = smov (!%p724_p11, %s2324_s5), 3 }
  0x25   : > { %s2017_s6 = sshll.u32 %s720_s2, 3  ;;  %vm3260_vm7 = vcmask 1045509   ;;  %vm3259_vm8 = vcmask 1046534   ;;  %vm3258_vm9 = vcmask 1047559   ;;  %s2018_s25 = sshll.u32 %s3324_s5, 3 }
  0x26   : > { %s722_s28 = scalar_lea.vmem %s3284_s26, %s2017_s6  ;;  %s3288_s29 = smov %s3287_s4  ;;  %v936_v30 = vld [vmem:[%s3287_s4 + $0xf0] sm:$0xff] }
  0x27   : > { %v728_v1 = vld [vmem:[%s722_s28] sm:$0xff]  ;;  %v729_v2 = vld [vmem:[%s722_s28 + $0x8] sm:$0xff]  ;;  %v730_v3 = vld [vmem:[%s722_s28 + $0x10] sm:$0xff]  ;;  %944 = vmatpush.msra.mxu2 %v936_v30  ;;  %s3289_s6 = sld [smem:[#allocation17_spill]]  ;;  %s2181_s4 = smov 16  }
  0x28   : > { %2020 = vmatmul.msk.f32.vlgmr.msra.gmra.mxu0 %vm742_vm1, %v728_v1  ;;  %v731_v4 = vld [vmem:[%s722_s28 + $0x18] sm:$0xff]  ;;  %v732_v9 = vld [vmem:[%s722_s28 + $0x20] sm:$0xff]  ;;  %v733_v11 = vld [vmem:[%s722_s28 + $0x28] sm:$0xff]  ;;  %s2137_s26 = scalar_lea.hbm %s3246_s23, 32 }
  0x29   : > { %v734_v12 = vld [vmem:[%s722_s28 + $0x30] sm:$0xff]  ;;  %v735_v13 = vld [vmem:[%s722_s28 + $0x38] sm:$0xff]  ;;  %s3286_s28 = sld [smem:[#allocation15_spill]]  ;;  %v934_v32 = vld [vmem:[%s3288_s29 + $0xe0] sm:$0xff] }
  0x2a   : > { %v827_v5 = vld [vmem:[%s3285_s0 + $0x38] sm:$0xff]  ;;  %v826_v6 = vld [vmem:[%s3285_s0 + $0x30] sm:$0xff]  ;;  %v825_v7 = vld [vmem:[%s3285_s0 + $0x28] sm:$0xff]  ;;  %945 = vmatpush.msra.mxu2 %v934_v32 }
  0x2b   : > { %865 = vmatpush.msra.mxu1 %v827_v5  ;;  %v824_v8 = vld [vmem:[%s3285_s0 + $0x20] sm:$0xff]  ;;  %v823_v10 = vld [vmem:[%s3285_s0 + $0x18] sm:$0xff]  ;;  %v822_v14 = vld [vmem:[%s3285_s0 + $0x10] sm:$0xff] }
  0x2c   : > { %v821_v15 = vld [vmem:[%s3285_s0 + $0x8] sm:$0xff]  ;;  %v820_v16 = vld [vmem:[%s3285_s0] sm:$0xff]  ;;  %v937_v31 = vld [vmem:[%s3288_s29 + $0xf8] sm:$0xff]  ;;  %s3292_s0 = sld [smem:[#allocation19_spill]] }
  0x2d   : > { %866 = vmatpush.msra.mxu1 %v826_v6  ;;  %985 = vmatpush.msra.mxu3 %v937_v31  ;;  %v935_v33 = vld [vmem:[%s3288_s29 + $0xe8] sm:$0xff]  ;;  %v932_v34 = vld [vmem:[%s3288_s29 + $0xd0] sm:$0xff]  ;;  %v933_v35 = vld [vmem:[%s3288_s29 + $0xd8] sm:$0xff] }
  0x2e   : > { %v930_v38 = vld [vmem:[%s3288_s29 + $0xc0] sm:$0xff]  ;;  %v931_v39 = vld [vmem:[%s3288_s29 + $0xc8] sm:$0xff]  ;;  %946 = vmatpush.msra.mxu2 %v932_v34  ;;  %v928_v41 = vld [vmem:[%s3288_s29 + $0xb0] sm:$0xff] }
  0x2f   : > { %867 = vmatpush.msra.mxu1 %v825_v7  ;;  %v2398_v17 = vld [vmem:[%s3286_s28] ss:$0 sm:$0xff]  ;;  %986 = vmatpush.msra.mxu3 %v935_v33  ;;  %v929_v42 = vld [vmem:[%s3288_s29 + $0xb8] sm:$0xff]  ;;  %v927_v44 = vld [vmem:[%s3288_s29 + $0xa8] sm:$0xff] }
  0x30   : > { %2021 = vmatmul.msk.f32.gmra.mxu0 %vm742_vm1, %v729_v2  ;;  %947 = vmatpush.msra.mxu2 %v930_v38  ;;  %v926_v43 = vld [vmem:[%s3288_s29 + $0xa0] sm:$0xff]  ;;  %v924_v45 = vld [vmem:[%s3288_s29 + $0x90] sm:$0xff]  ;;  %v925_v46 = vld [vmem:[%s3288_s29 + $0x98] sm:$0xff] }
  0x31   : > { %868 = vmatpush.msra.mxu1 %v824_v8  ;;  %987 = vmatpush.msra.mxu3 %v933_v35  ;;  %v922_v49 = vld [vmem:[%s3288_s29 + $0x80] sm:$0xff]  ;;  %v923_v50 = vld [vmem:[%s3288_s29 + $0x88] sm:$0xff]  ;;  %v920_v52 = vld [vmem:[%s3288_s29 + $0x70] sm:$0xff] }
  0x32   : > { %948 = vmatpush.msra.mxu2 %v928_v41  ;;  %v921_v53 = vld [vmem:[%s3288_s29 + $0x78] sm:$0xff]  ;;  %v918_v54 = vld [vmem:[%s3288_s29 + $0x60] sm:$0xff]  ;;  %v919_v55 = vld [vmem:[%s3288_s29 + $0x68] sm:$0xff] }
  0x33   : > { %869 = vmatpush.msra.mxu1 %v823_v10  ;;  %988 = vmatpush.msra.mxu3 %v931_v39  ;;  %v916_v56 = vld [vmem:[%s3288_s29 + $0x50] sm:$0xff]  ;;  %v917_v57 = vld [vmem:[%s3288_s29 + $0x58] sm:$0xff]  ;;  %v914_v60 = vld [vmem:[%s3288_s29 + $0x40] sm:$0xff] }
  0x34   : > { %949 = vmatpush.msra.mxu2 %v926_v43  ;;  %v915_v61 = vld [vmem:[%s3288_s29 + $0x48] sm:$0xff]  ;;  %v912_v63 = vld [vmem:[%s3288_s29 + $0x30] sm:$0xff]  ;;  %v913_v0 = vld [vmem:[%s3288_s29 + $0x38] sm:$0xff] }
  0x35   : > { %870 = vmatpush.msra.mxu1 %v822_v14  ;;  %989 = vmatpush.msra.mxu3 %v929_v42  ;;  %v911_v5 = vld [vmem:[%s3288_s29 + $0x28] sm:$0xff]  ;;  %v908_v6 = vld [vmem:[%s3288_s29 + $0x10] sm:$0xff]  ;;  %v909_v7 = vld [vmem:[%s3288_s29 + $0x18] sm:$0xff] }
  0x36   : > { %950 = vmatpush.msra.mxu2 %v924_v45  ;;  %v906_v8 = vld [vmem:[%s3288_s29] sm:$0xff]  ;;  %v1248_v34 = vld [vmem:[%s3290_s8 + $0x58] sm:$0xff]  ;;  %v1246_v38 = vld [vmem:[%s3290_s8 + $0x48] sm:$0xff] }
  0x37   : > { %871 = vmatpush.msra.mxu1 %v821_v15  ;;  %990 = vmatpush.msra.mxu3 %v927_v44  ;;  %v2515_v10 = vld [vmem:[%s3289_s6] ss:$0 sm:$0xff]  ;;  %v1264_v35 = vld [vmem:[%s3290_s8 + $0xd8] sm:$0xff]  ;;  %v1262_v39 = vld [vmem:[%s3290_s8 + $0xc8] sm:$0xff] }
  0x38   : > { %2022 = vmatmul.msk.f32.gmra.mxu0 %vm742_vm1, %v730_v3  ;;  %951 = vmatpush.msra.mxu2 %v922_v49  ;;  %v1249_v31 = vld [vmem:[%s3290_s8 + $0x60] sm:$0xff]  ;;  %v1244_v45 = vld [vmem:[%s3290_s8 + $0x38] sm:$0xff]  ;;  %v1242_v49 = vld [vmem:[%s3290_s8 + $0x28] sm:$0xff] }
  0x39   : > { %872 = vmatpush.msra.mxu1 %v820_v16  ;;  %991 = vmatpush.msra.mxu3 %v925_v46  ;;  %v1265_v32 = vld [vmem:[%s3290_s8 + $0xe0] sm:$0xff]  ;;  %v1260_v46 = vld [vmem:[%s3290_s8 + $0xb8] sm:$0xff] }
  0x3a   : > { %952 = vmatpush.msra.mxu2 %v920_v52  ;;  %v1245_v42 = vld [vmem:[%s3290_s8 + $0x40] sm:$0xff] }
  0x3b   : > { %992 = vmatpush.msra.mxu3 %v923_v50  ;;  %v1261_v43 = vld [vmem:[%s3290_s8 + $0xc0] sm:$0xff]  ;;  %v1258_v50 = vld [vmem:[%s3290_s8 + $0xa8] sm:$0xff] }
  0x3c   : > { %953 = vmatpush.msra.mxu2 %v918_v54  ;;  %v1257_v54 = vld [vmem:[%s3290_s8 + $0xa0] sm:$0xff] }
  0x3d   : > { %993 = vmatpush.msra.mxu3 %v921_v53  ;;  %v1241_v53 = vld [vmem:[%s3290_s8 + $0x20] sm:$0xff] }
  0x3e   : > { %954 = vmatpush.msra.mxu2 %v916_v56  ;;  %v1240_v56 = vld [vmem:[%s3290_s8 + $0x18] sm:$0xff] }
  0x3f   : > { %994 = vmatpush.msra.mxu3 %v919_v55 }
  0x40   : > { %2023 = vmatmul.msk.f32.gmra.mxu0 %vm742_vm1, %v731_v4  ;;  %955 = vmatpush.msra.mxu2 %v914_v60  ;;  %v910_v4 = vld [vmem:[%s3288_s29 + $0x20] sm:$0xff] }
  0x41   : > { %995 = vmatpush.msra.mxu3 %v917_v57  ;;  %v1256_v57 = vld [vmem:[%s3290_s8 + $0x98] sm:$0xff] }
  0x42   : > { %956 = vmatpush.msra.mxu2 %v912_v63  ;;  %v1238_v63 = vld [vmem:[%s3290_s8 + $0x8] sm:$0xff] }
  0x43   : > { %996 = vmatpush.msra.mxu3 %v915_v61 }
  0x44   : > { %957 = vmatpush.msra.mxu2 %v910_v4  ;;  %v1152_v4 = vld [vmem:[%s3291_s9 + $0xf0] sm:$0xff] }
  0x45   : > { %997 = vmatpush.msra.mxu3 %v913_v0  ;;  %v1254_v0 = vld [vmem:[%s3290_s8 + $0x88] sm:$0xff] }
  0x46   : > { %958 = vmatpush.msra.mxu2 %v908_v6 }
  0x47   : > { %998 = vmatpush.msra.mxu3 %v911_v5  ;;  %v938_v5 = vld [vmem:[%s3292_s0] sm:$0x3]  ;;  %s3293_s0 = sld [smem:[#allocation13_spill]] }
  0x48   : > { %2024 = vmatmul.msk.f32.gmra.mxu0 %vm742_vm1, %v732_v9  ;;  %v907_v9 = vld [vmem:[%s3288_s29 + $0x8] sm:$0xff]  ;;  %959 = vmatpush.msra.mxu2 %v906_v8  ;;  %v2630_v6 = vperm.slane %v938_v5, 0 }
  0x49   : > { %999 = vmatpush.msra.mxu3 %v909_v7  ;;  %v2632_v7 = vperm.slane %v938_v5, 1  ;;  %v1151_v8 = vld [vmem:[%s3291_s9 + $0xe8] sm:$0xff] }
  0x4b   : > { %1000 = vmatpush.msra.mxu3 %v907_v9  ;;  %v1150_v9 = vld [vmem:[%s3291_s9 + $0xe0] sm:$0xff] }
  0x4d   : > { %s727_s2 = scalar_lea.vmem %s3293_s0, %s2018_s25 }
  0x50   : > { %2025 = vmatmul.msk.f32.gmra.mxu0 %vm742_vm1, %v733_v11 }
  0x58   : > { %2026 = vmatmul.msk.f32.gmra.mxu0 %vm742_vm1, %v734_v12 }
  0x60   : > { %2027 = vmatmul.msk.f32.gmra.mxu0 %vm742_vm1, %v735_v13 }
  0xa5   : > { %v788_v18 = vpop.f32.mrf.mxu0 }
  0xa6   : > { %v789_v19 = vadd.f32 %v2398_v17, %v788_v18 }
  0xa8   : > { %v812_v20 = vmax.f32 %v789_v19, 0.0 }
  0xaa   : > { %2028 = vmatmul.msk.f32.vlgmr.msra.gmra.mxu1 %vm832_vm2, %v812_v20 }
  0xad   : > { %v791_v21 = vpop.f32.mrf.mxu0 }
  0xae   : > { %v792_v22 = vadd.f32 %v2398_v17, %v791_v21 }
  0xb0   : > { %v813_v23 = vmax.f32 %v792_v22, 0.0 }
  0xb2   : > { %2029 = vmatmul.msk.f32.gmra.mxu1 %vm832_vm2, %v813_v23  ;;  %v1252_v23 = vld [vmem:[%s3290_s8 + $0x78] sm:$0xff] }
  0xb3   : > { %1269 = vmatpush.msrb.mxu2 %v1252_v23  ;;  %v1147_v23 = vld [vmem:[%s3291_s9 + $0xc8] sm:$0xff] }
  0xb5   : > { %v794_v24 = vpop.f32.mrf.mxu0 }
  0xb6   : > { %v795_v25 = vadd.f32 %v2398_v17, %v794_v24  ;;  %v1268_v24 = vld [vmem:[%s3290_s8 + $0xf8] sm:$0xff] }
  0xb7   : > { %1310 = vmatpush.msrb.mxu3 %v1268_v24  ;;  %v1146_v24 = vld [vmem:[%s3291_s9 + $0xc0] sm:$0xff] }
  0xb8   : > { %v814_v26 = vmax.f32 %v795_v25, 0.0  ;;  %v1251_v25 = vld [vmem:[%s3290_s8 + $0x70] sm:$0xff] }
  0xb9   : > { %1270 = vmatpush.msrb.mxu2 %v1251_v25  ;;  %v1134_v25 = vld [vmem:[%s3291_s9 + $0x60] sm:$0xff] }
  0xba   : > { %2030 = vmatmul.msk.f32.gmra.mxu1 %vm832_vm2, %v814_v26  ;;  %v1267_v26 = vld [vmem:[%s3290_s8 + $0xf0] sm:$0xff] }
  0xbb   : > { %1311 = vmatpush.msrb.mxu3 %v1267_v26 }
  0xbd   : > { %v797_v27 = vpop.f32.mrf.mxu0 }
  0xbe   : > { %v798_v28 = vadd.f32 %v2398_v17, %v797_v27  ;;  %v1250_v27 = vld [vmem:[%s3290_s8 + $0x68] sm:$0xff] }
  0xbf   : > { %1271 = vmatpush.msrb.mxu2 %v1250_v27 }
  0xc0   : > { %v815_v29 = vmax.f32 %v798_v28, 0.0  ;;  %v1266_v28 = vld [vmem:[%s3290_s8 + $0xe8] sm:$0xff] }
  0xc1   : > { %1312 = vmatpush.msrb.mxu3 %v1266_v28  ;;  %1272 = vmatpush.msrb.mxu2 %v1249_v31  ;;  %v1133_v28 = vld [vmem:[%s3291_s9 + $0x58] sm:$0xff]  ;;  %v1132_v31 = vld [vmem:[%s3291_s9 + $0x50] sm:$0xff] }
  0xc2   : > { %2031 = vmatmul.msk.f32.gmra.mxu1 %vm832_vm2, %v815_v29 }
  0xc3   : > { %1313 = vmatpush.msrb.mxu3 %v1265_v32  ;;  %1273 = vmatpush.msrb.mxu2 %v1248_v34  ;;  %v1131_v32 = vld [vmem:[%s3291_s9 + $0x48] sm:$0xff]  ;;  %v1144_v34 = vld [vmem:[%s3291_s9 + $0xb0] sm:$0xff] }
  0xc5   : > { %v800_v36 = vpop.f32.mrf.mxu0  ;;  %1314 = vmatpush.msrb.mxu3 %v1264_v35  ;;  %v1130_v35 = vld [vmem:[%s3291_s9 + $0x40] sm:$0xff] }
  0xc6   : > { %v801_v37 = vadd.f32 %v2398_v17, %v800_v36  ;;  %v1247_v36 = vld [vmem:[%s3290_s8 + $0x50] sm:$0xff] }
  0xc7   : > { %1274 = vmatpush.msrb.mxu2 %v1247_v36 }
  0xc8   : > { %v816_v40 = vmax.f32 %v801_v37, 0.0  ;;  %v1263_v37 = vld [vmem:[%s3290_s8 + $0xd0] sm:$0xff] }
  0xc9   : > { %1315 = vmatpush.msrb.mxu3 %v1263_v37  ;;  %1275 = vmatpush.msrb.mxu2 %v1246_v38  ;;  %v1129_v38 = vld [vmem:[%s3291_s9 + $0x38] sm:$0xff] }
  0xca   : > { %2032 = vmatmul.msk.f32.gmra.mxu1 %vm832_vm2, %v816_v40 }
  0xcb   : > { %1316 = vmatpush.msrb.mxu3 %v1262_v39  ;;  %1276 = vmatpush.msrb.mxu2 %v1245_v42  ;;  %v1143_v42 = vld [vmem:[%s3291_s9 + $0xa8] sm:$0xff] }
  0xcd   : > { %v803_v47 = vpop.f32.mrf.mxu0  ;;  %1317 = vmatpush.msrb.mxu3 %v1261_v43  ;;  %1277 = vmatpush.msrb.mxu2 %v1244_v45  ;;  %v1142_v43 = vld [vmem:[%s3291_s9 + $0xa0] sm:$0xff] }
  0xce   : > { %v804_v48 = vadd.f32 %v2398_v17, %v803_v47  ;;  %v1243_v47 = vld [vmem:[%s3290_s8 + $0x30] sm:$0xff]  ;;  %v1126_v45 = vld [vmem:[%s3291_s9 + $0x20] sm:$0xff] }
  0xcf   : > { %1318 = vmatpush.msrb.mxu3 %v1260_v46  ;;  %1278 = vmatpush.msrb.mxu2 %v1243_v47 }
  0xd0   : > { %v817_v51 = vmax.f32 %v804_v48, 0.0  ;;  %v1259_v48 = vld [vmem:[%s3290_s8 + $0xb0] sm:$0xff] }
  0xd1   : > { %1319 = vmatpush.msrb.mxu3 %v1259_v48  ;;  %1279 = vmatpush.msrb.mxu2 %v1242_v49  ;;  %v1141_v48 = vld [vmem:[%s3291_s9 + $0x98] sm:$0xff] }
  0xd2   : > { %2033 = vmatmul.msk.f32.gmra.mxu1 %vm832_vm2, %v817_v51  ;;  %v1125_v49 = vld [vmem:[%s3291_s9 + $0x18] sm:$0xff] }
  0xd3   : > { %1320 = vmatpush.msrb.mxu3 %v1258_v50  ;;  %1280 = vmatpush.msrb.mxu2 %v1241_v53  ;;  %v1124_v53 = vld [vmem:[%s3291_s9 + $0x10] sm:$0xff] }
  0xd5   : > { %v806_v58 = vpop.f32.mrf.mxu0  ;;  %1321 = vmatpush.msrb.mxu3 %v1257_v54  ;;  %1281 = vmatpush.msrb.mxu2 %v1240_v56  ;;  %v1139_v56 = vld [vmem:[%s3291_s9 + $0x88] sm:$0xff] }
  0xd6   : > { %v807_v59 = vadd.f32 %v2398_v17, %v806_v58  ;;  %v1239_v58 = vld [vmem:[%s3290_s8 + $0x10] sm:$0xff] }
  0xd7   : > { %1322 = vmatpush.msrb.mxu3 %v1256_v57  ;;  %1282 = vmatpush.msrb.mxu2 %v1239_v58  ;;  %v1123_v57 = vld [vmem:[%s3291_s9 + $0x8] sm:$0xff] }
  0xd8   : > { %v818_v62 = vmax.f32 %v807_v59, 0.0  ;;  %v1255_v59 = vld [vmem:[%s3290_s8 + $0x90] sm:$0xff] }
  0xd9   : > { %1323 = vmatpush.msrb.mxu3 %v1255_v59  ;;  %1283 = vmatpush.msrb.mxu2 %v1238_v63 }
  0xda   : > { %2034 = vmatmul.msk.f32.gmra.mxu1 %vm832_vm2, %v818_v62 }
  0xdb   : > { %1324 = vmatpush.msrb.mxu3 %v1254_v0 }
  0xdd   : > { %v809_v1 = vpop.f32.mrf.mxu0 }
  0xde   : > { %v810_v2 = vadd.f32 %v2398_v17, %v809_v1  ;;  %v1237_v1 = vld [vmem:[%s3290_s8] sm:$0xff] }
  0xdf   : > { %1284 = vmatpush.msrb.mxu2 %v1237_v1 }
  0xe0   : > { %v819_v3 = vmax.f32 %v810_v2, 0.0  ;;  %v1253_v2 = vld [vmem:[%s3290_s8 + $0x80] sm:$0xff] }
  0xe1   : > { %1325 = vmatpush.msrb.mxu3 %v1253_v2 }
  0xe2   : > { %2035 = vmatmul.msk.f32.gmra.mxu1 %vm832_vm2, %v819_v3  ;;  %v1153_v3 = vld [vmem:[%s3291_s9 + $0xf8] sm:$0xff] }
  0xe3   : > { %1217 = vmatpush.msrb.mxu1 %v1153_v3 }
  0xe5   : > { %1218 = vmatpush.msrb.mxu1 %v1152_v4  ;;  %v1684_v4 = vld [vmem:[%s3236_s13] sm:$0x7] }
  0xe7   : > { %1219 = vmatpush.msrb.mxu1 %v1151_v8 }
  0xe9   : > { %1220 = vmatpush.msrb.mxu1 %v1150_v9 }
 0x127   : > { %v874_v11 = vpop.f32.mrf.mxu1 }
 0x128   : > { %v875_v12 = vadd.f32 %v2515_v10, %v874_v11 }
 0x12a   : > { %v898_v13 = vmax.f32 %v875_v12, 0.0 }
 0x12c   : > { %960 = vmatmul.f32.vlgmr.msra.gmra.mxu2 %v898_v13  ;;  %1001 = vmatmul.f32.vlgmr.msra.gmra.mxu3 %v898_v13 }
 0x12f   : > { %v877_v14 = vpop.f32.mrf.mxu1 }
 0x130   : > { %v878_v15 = vadd.f32 %v2515_v10, %v877_v14  ;;  %v1149_v14 = vld [vmem:[%s3291_s9 + $0xd8] sm:$0xff] }
 0x131   : > { %1221 = vmatpush.msrb.mxu1 %v1149_v14 }
 0x132   : > { %v899_v16 = vmax.f32 %v878_v15, 0.0  ;;  %v1148_v15 = vld [vmem:[%s3291_s9 + $0xd0] sm:$0xff] }
 0x133   : > { %1222 = vmatpush.msrb.mxu1 %v1148_v15 }
 0x134   : > { %963 = vmatmul.f32.gmra.mxu2 %v899_v16  ;;  %1004 = vmatmul.f32.gmra.mxu3 %v899_v16 }
 0x135   : > { %1223 = vmatpush.msrb.mxu1 %v1147_v23 }
 0x137   : > { %v880_v17 = vpop.f32.mrf.mxu1  ;;  %1224 = vmatpush.msrb.mxu1 %v1146_v24 }
 0x138   : > { %v881_v18 = vadd.f32 %v2515_v10, %v880_v17 }
 0x13a   : > { %v900_v19 = vmax.f32 %v881_v18, 0.0  ;;  %v1137_v18 = vld [vmem:[%s3291_s9 + $0x78] sm:$0xff] }
 0x13b   : > { %1197 = vmatpush.msrb.mxu0 %v1137_v18 }
 0x13c   : > { %966 = vmatmul.f32.gmra.mxu2 %v900_v19  ;;  %1007 = vmatmul.f32.gmra.mxu3 %v900_v19 }
 0x13f   : > { %v883_v20 = vpop.f32.mrf.mxu1 }
 0x140   : > { %v884_v21 = vadd.f32 %v2515_v10, %v883_v20 }
 0x142   : > { %v901_v22 = vmax.f32 %v884_v21, 0.0  ;;  %v1136_v21 = vld [vmem:[%s3291_s9 + $0x70] sm:$0xff] }
 0x143   : > { %1198 = vmatpush.msrb.mxu0 %v1136_v21 }
 0x144   : > { %969 = vmatmul.f32.gmra.mxu2 %v901_v22  ;;  %1010 = vmatmul.f32.gmra.mxu3 %v901_v22  ;;  %v1135_v22 = vld [vmem:[%s3291_s9 + $0x68] sm:$0xff] }
 0x145   : > { %1199 = vmatpush.msrb.mxu0 %v1135_v22 }
 0x147   : > { %v886_v29 = vpop.f32.mrf.mxu1  ;;  %1200 = vmatpush.msrb.mxu0 %v1134_v25 }
 0x148   : > { %v887_v30 = vadd.f32 %v2515_v10, %v886_v29 }
 0x149   : > { %1201 = vmatpush.msrb.mxu0 %v1133_v28 }
 0x14a   : > { %v902_v33 = vmax.f32 %v887_v30, 0.0 }
 0x14b   : > { %1202 = vmatpush.msrb.mxu0 %v1132_v31 }
 0x14c   : > { %972 = vmatmul.f32.gmra.mxu2 %v902_v33  ;;  %1013 = vmatmul.f32.gmra.mxu3 %v902_v33  ;;  %v1145_v33 = vld [vmem:[%s3291_s9 + $0xb8] sm:$0xff] }
 0x14d   : > { %1225 = vmatpush.msrb.mxu1 %v1145_v33  ;;  %1203 = vmatpush.msrb.mxu0 %v1131_v32 }
 0x14f   : > { %v889_v40 = vpop.f32.mrf.mxu1  ;;  %1226 = vmatpush.msrb.mxu1 %v1144_v34  ;;  %1204 = vmatpush.msrb.mxu0 %v1130_v35 }
 0x150   : > { %v890_v41 = vadd.f32 %v2515_v10, %v889_v40 }
 0x151   : > { %1205 = vmatpush.msrb.mxu0 %v1129_v38  ;;  %1227 = vmatpush.msrb.mxu1 %v1143_v42 }
 0x152   : > { %v903_v44 = vmax.f32 %v890_v41, 0.0  ;;  %v1128_v41 = vld [vmem:[%s3291_s9 + $0x30] sm:$0xff] }
 0x153   : > { %1206 = vmatpush.msrb.mxu0 %v1128_v41  ;;  %1228 = vmatpush.msrb.mxu1 %v1142_v43 }
 0x154   : > { %975 = vmatmul.f32.gmra.mxu2 %v903_v44  ;;  %1016 = vmatmul.f32.gmra.mxu3 %v903_v44  ;;  %v1127_v44 = vld [vmem:[%s3291_s9 + $0x28] sm:$0xff] }
 0x155   : > { %1207 = vmatpush.msrb.mxu0 %v1127_v44  ;;  %1229 = vmatpush.msrb.mxu1 %v1141_v48 }
 0x157   : > { %v892_v51 = vpop.f32.mrf.mxu1  ;;  %1208 = vmatpush.msrb.mxu0 %v1126_v45 }
 0x158   : > { %v893_v52 = vadd.f32 %v2515_v10, %v892_v51 }
 0x159   : > { %1209 = vmatpush.msrb.mxu0 %v1125_v49 }
 0x15a   : > { %v904_v55 = vmax.f32 %v893_v52, 0.0  ;;  %v1140_v52 = vld [vmem:[%s3291_s9 + $0x90] sm:$0xff] }
 0x15b   : > { %1230 = vmatpush.msrb.mxu1 %v1140_v52  ;;  %1210 = vmatpush.msrb.mxu0 %v1124_v53 }
 0x15c   : > { %978 = vmatmul.f32.gmra.mxu2 %v904_v55  ;;  %1019 = vmatmul.f32.gmra.mxu3 %v904_v55 }
 0x15d   : > { %1231 = vmatpush.msrb.mxu1 %v1139_v56  ;;  %1211 = vmatpush.msrb.mxu0 %v1123_v57 }
 0x15f   : > { %v895_v60 = vpop.f32.mrf.mxu1 }
 0x160   : > { %v896_v61 = vadd.f32 %v2515_v10, %v895_v60  ;;  %v1138_v60 = vld [vmem:[%s3291_s9 + $0x80] sm:$0xff] }
 0x161   : > { %1232 = vmatpush.msrb.mxu1 %v1138_v60 }
 0x162   : > { %v905_v62 = vmax.f32 %v896_v61, 0.0  ;;  %v1122_v61 = vld [vmem:[%s3291_s9] sm:$0xff] }
 0x163   : > { %1212 = vmatpush.msrb.mxu0 %v1122_v61  ;;  %2036 = vmatpush.msk.msra.mxu1 %vm767_vm0, %v1684_v4 }
 0x164   : > { %981 = vmatmul.f32.gmra.mxu2 %v905_v62  ;;  %1022 = vmatmul.f32.gmra.mxu3 %v905_v62 }
 0x1af   : > { %v961_v10 = vpop.f32.mrf.mxu2  ;;  %v1002_v11 = vpop.f32.mrf.mxu3 }
 0x1b0   : > { %v2641_v12 = vadd.f32 %v961_v10, %v2630_v6  ;;  %v2644_v13 = vadd.f32 %v1002_v11, %v2632_v7 }
 0x1b2   : > { %1285 = vmatmul.f32.vlgmr.msrb.gmra.mxu2 %v2641_v12  ;;  %1326 = vmatmul.f32.vlgmr.msrb.gmra.mxu3 %v2644_v13  ;;  %v1026_v54 = vrot.slane %v2641_v12, 4  ;;  %v1032_v55 = vrot.slane %v2644_v13, 4 }
 0x1b4   : > { %v1027_v62 = vmax.f32 %v2641_v12, %v1026_v54  ;;  %v1033_v63 = vmax.f32 %v2644_v13, %v1032_v55 }
 0x1b6   : > { %v1028_v9 = vrot.slane %v1027_v62, 2  ;;  %v1034_v10 = vrot.slane %v1033_v63, 2 }
 0x1b7   : > { %v964_v16 = vpop.f32.mrf.mxu2  ;;  %v1005_v17 = vpop.f32.mrf.mxu3 }
 0x1b8   : > { %v2658_v19 = vadd.f32 %v964_v16, %v2630_v6  ;;  %v2661_v20 = vadd.f32 %v1005_v17, %v2632_v7  ;;  %v1029_v21 = vmax.f32 %v1027_v62, %v1028_v9  ;;  %v1035_v22 = vmax.f32 %v1033_v63, %v1034_v10 }
 0x1ba   : > { %1288 = vmatmul.f32.gmra.mxu2 %v2658_v19  ;;  %1329 = vmatmul.f32.gmra.mxu3 %v2661_v20  ;;  %v1038_v58 = vrot.slane %v2658_v19, 4  ;;  %v1044_v59 = vrot.slane %v2661_v20, 4  ;;  %v1036_v41 = vrot.slane %v1035_v22, 1 }
 0x1bc   : > { %v1039_v0 = vmax.f32 %v2658_v19, %v1038_v58  ;;  %v1045_v1 = vmax.f32 %v2661_v20, %v1044_v59  ;;  %v1037_v54 = vmax.f32 %v1035_v22, %v1036_v41 }
 0x1be   : > { %v1040_v15 = vrot.slane %v1039_v0, 2  ;;  %v1046_v16 = vrot.slane %v1045_v1, 2 }
 0x1bf   : > { %v967_v26 = vpop.f32.mrf.mxu2  ;;  %v1008_v27 = vpop.f32.mrf.mxu3 }
 0x1c0   : > { %v2684_v29 = vadd.f32 %v967_v26, %v2630_v6  ;;  %v2687_v30 = vadd.f32 %v1008_v27, %v2632_v7  ;;  %v1041_v27 = vmax.f32 %v1039_v0, %v1040_v15  ;;  %v1047_v28 = vmax.f32 %v1045_v1, %v1046_v16 }
 0x1c2   : > { %1291 = vmatmul.f32.gmra.mxu2 %v2684_v29  ;;  %1332 = vmatmul.f32.gmra.mxu3 %v2687_v30  ;;  %v1050_v11 = vrot.slane %v2684_v29, 4  ;;  %v1056_v12 = vrot.slane %v2687_v30, 4  ;;  %v1042_v45 = vrot.slane %v1041_v27, 1 }
 0x1c4   : > { %v1051_v23 = vmax.f32 %v2684_v29, %v1050_v11  ;;  %v1057_v24 = vmax.f32 %v2687_v30, %v1056_v12  ;;  %v1030_v29 = vrot.slane %v1029_v21, 1  ;;  %v1043_v61 = vmax.f32 %v1041_v27, %v1042_v45 }
 0x1c6   : > { %v1052_v30 = vrot.slane %v1051_v23, 2  ;;  %v1058_v42 = vrot.slane %v1057_v24, 2  ;;  %v1031_v53 = vmax.f32 %v1029_v21, %v1030_v29 }
 0x1c7   : > { %v970_v36 = vpop.f32.mrf.mxu2  ;;  %v1011_v37 = vpop.f32.mrf.mxu3 }
 0x1c8   : > { %v2710_v39 = vadd.f32 %v970_v36, %v2630_v6  ;;  %v2713_v40 = vadd.f32 %v1011_v37, %v2632_v7  ;;  %v1053_v55 = vmax.f32 %v1051_v23, %v1052_v30  ;;  %v1059_v56 = vmax.f32 %v1057_v24, %v1058_v42 }
 0x1ca   : > { %1294 = vmatmul.f32.gmra.mxu2 %v2710_v39  ;;  %1335 = vmatmul.f32.gmra.mxu3 %v2713_v40  ;;  %v1062_v13 = vrot.slane %v2710_v39, 4  ;;  %v1068_v14 = vrot.slane %v2713_v40, 4  ;;  %v1054_v9 = vrot.slane %v1053_v55, 1  ;;  %v1060_v10 = vrot.slane %v1059_v56, 1 }
 0x1cc   : > { %v1063_v25 = vmax.f32 %v2710_v39, %v1062_v13  ;;  %v1069_v26 = vmax.f32 %v2713_v40, %v1068_v14  ;;  %v1055_v22 = vmax.f32 %v1053_v55, %v1054_v9  ;;  %v1061_v23 = vmax.f32 %v1059_v56, %v1060_v10  ;;  %v736_v55 = vld [vmem:[%s727_s2] sm:$0xff]  ;;  %v1406_v56 = vld [vmem:[%s3234_s11 + $0x78] sm:$0xff]  ;;  %s715_s2 = sand.u32 1, %s2171_s30  }
 0x1cd   : > { %1411 = vmatpush.msra.mxu0 %v1406_v56  ;;  %v1394_v9 = vld [vmem:[%s3234_s11 + $0x18] sm:$0xff]  ;;  %v1720_v10 = vld [vmem:[%s3238_s15 + $0x20] sm:$0xff]  ;;  %s2015_s24 = sshll.u32 %s715_s2, 3  ;;  %s1925_s1 = scalar_lea.sflag [#allocation3], %s715_s2 }
 0x1ce   : > { %v1064_v39 = vrot.slane %v1063_v25, 2  ;;  %v1070_v43 = vrot.slane %v1069_v26, 2  ;;  %s717_s6 = scalar_lea.vmem [#allocation2], %s2015_s24 }
 0x1cf   : > { %v973_v46 = vpop.f32.mrf.mxu2  ;;  %v1014_v47 = vpop.f32.mrf.mxu3  ;;  %s1937_s5 = sshll.u32 %s717_s6, 4  ;;  %s1938_s5 = int_to_ptr.vmem [resolvable:$true] %s1937_s5 }
 0x1d0   : > { %v974_v50 = vadd.f32 %v973_v46, %v2630_v6  ;;  %v1015_v51 = vadd.f32 %v1014_v47, %v2632_v7  ;;  %v1048_v46 = vrot.slane %v1047_v28, 1  ;;  %v1065_v57 = vmax.f32 %v1063_v25, %v1064_v39 }
 0x1d1   : > { %v1071_v58 = vmax.f32 %v1069_v26, %v1070_v43 }
 0x1d2   : > { %1297 = vmatmul.f32.gmra.mxu2 %v974_v50  ;;  %1338 = vmatmul.f32.gmra.mxu3 %v1015_v51  ;;  %v1074_v17 = vrot.slane %v974_v50, 4  ;;  %v1080_v18 = vrot.slane %v1015_v51, 4  ;;  %v1049_v62 = vmax.f32 %v1047_v28, %v1048_v46  ;;  %v1066_v13 = vrot.slane %v1065_v57, 1 }
 0x1d3   : > { %v1072_v14 = vrot.slane %v1071_v58, 1 }
 0x1d4   : > { %v1075_v31 = vmax.f32 %v974_v50, %v1074_v17  ;;  %v1081_v32 = vmax.f32 %v1015_v51, %v1080_v18  ;;  %v1175_v17 = vsel %vm1174_vm3, %v1043_v61, %v1031_v53  ;;  %v1067_v26 = vmax.f32 %v1065_v57, %v1066_v13  ;;  %v1405_v57 = vld [vmem:[%s3234_s11 + $0x70] sm:$0xff]  ;;  %v1392_v13 = vld [vmem:[%s3234_s11 + $0x8] sm:$0xff] }
 0x1d5   : > { %v1073_v27 = vmax.f32 %v1071_v58, %v1072_v14  ;;  %v1177_v41 = vsel %vm3263_vm4, %v1055_v22, %v1175_v17  ;;  %v1404_v58 = vld [vmem:[%s3234_s11 + $0x68] sm:$0xff]  ;;  %1412 = vmatpush.msra.mxu0 %v1405_v57  ;;  %v1401_v61 = vld [vmem:[%s3234_s11 + $0x50] sm:$0xff]  ;;  %v1716_v17 = vld [vmem:[%s3238_s15] sm:$0xff] }
 0x1d6   : > { %v1076_v47 = vrot.slane %v1075_v31, 2  ;;  %v1082_v48 = vrot.slane %v1081_v32, 2  ;;  %v1179_v43 = vsel %vm3262_vm5, %v1067_v26, %v1177_v41  ;;  %v1718_v14 = vld [vmem:[%s3238_s15 + $0x10] sm:$0xff]  ;;  %v2089_v26 = vld [vmem:[%s3237_s14] ss:$0 sm:$0xff]  ;;  %v1767_v57 = vld [vmem:[%s3240_s17 + $0x78] sm:$0xff] }
 0x1d7   : > { %v976_v2 = vpop.f32.mrf.mxu2  ;;  %v1017_v3 = vpop.f32.mrf.mxu3  ;;  %1413 = vmatpush.msra.mxu0 %v1404_v58  ;;  %v1766_v58 = vld [vmem:[%s3240_s17 + $0x70] sm:$0xff] }
 0x1d8   : > { %v977_v5 = vadd.f32 %v976_v2, %v2630_v6  ;;  %v1018_v8 = vadd.f32 %v1017_v3, %v2632_v7  ;;  %v1077_v63 = vmax.f32 %v1075_v31, %v1076_v47  ;;  %v1083_v0 = vmax.f32 %v1081_v32, %v1082_v48 }
 0x1d9   : > { %v1188_v32 = vsel %vm1174_vm3, %v1049_v62, %v1037_v54  ;;  %v1400_v62 = vld [vmem:[%s3234_s11 + $0x48] sm:$0xff] }
 0x1da   : > { %1300 = vmatmul.f32.gmra.mxu2 %v977_v5  ;;  %1341 = vmatmul.f32.gmra.mxu3 %v1018_v8  ;;  %v1086_v19 = vrot.slane %v977_v5, 4  ;;  %v1092_v20 = vrot.slane %v1018_v8, 4  ;;  %v1078_v18 = vrot.slane %v1077_v63, 1  ;;  %v1189_v42 = vsel %vm3263_vm4, %v1061_v23, %v1188_v32 }
 0x1dc   : > { %v1087_v35 = vmax.f32 %v977_v5, %v1086_v19  ;;  %v1093_v36 = vmax.f32 %v1018_v8, %v1092_v20  ;;  %v1084_v19 = vrot.slane %v1083_v0, 1 }
 0x1de   : > { %v1088_v49 = vrot.slane %v1087_v35, 2  ;;  %v1094_v50 = vrot.slane %v1093_v36, 2 }
 0x1df   : > { %v979_v33 = vpop.f32.mrf.mxu2  ;;  %v1020_v34 = vpop.f32.mrf.mxu3 }
 0x1e0   : > { %v980_v37 = vadd.f32 %v979_v33, %v2630_v6  ;;  %v1021_v38 = vadd.f32 %v1020_v34, %v2632_v7  ;;  %v1089_v3 = vmax.f32 %v1087_v35, %v1088_v49  ;;  %v1095_v4 = vmax.f32 %v1093_v36, %v1094_v50 }
 0x1e1   : > { %v1079_v33 = vmax.f32 %v1077_v63, %v1078_v18  ;;  %v1085_v34 = vmax.f32 %v1083_v0, %v1084_v19  ;;  %v1399_v63 = vld [vmem:[%s3234_s11 + $0x40] sm:$0xff]  ;;  %v1398_v0 = vld [vmem:[%s3234_s11 + $0x38] sm:$0xff] }
 0x1e2   : > { %v1098_v40 = vrot.slane %v980_v37, 4  ;;  %v1104_v44 = vrot.slane %v1021_v38, 4  ;;  %1303 = vmatmul.f32.gmra.mxu2 %v980_v37  ;;  %1344 = vmatmul.f32.gmra.mxu3 %v1021_v38  ;;  %v1096_v20 = vrot.slane %v1095_v4, 1 }
 0x1e3   : > { %v1181_v45 = vsel %vm3261_vm6, %v1079_v33, %v1179_v43 }
 0x1e4   : > { %v1099_v51 = vmax.f32 %v980_v37, %v1098_v40  ;;  %v1105_v52 = vmax.f32 %v1021_v38, %v1104_v44  ;;  %v1097_v36 = vmax.f32 %v1095_v4, %v1096_v20  ;;  %v1190_v44 = vsel %vm3262_vm5, %v1073_v27, %v1189_v42  ;;  %v1722_v4 = vld [vmem:[%s3238_s15 + $0x30] sm:$0xff] }
 0x1e5   : > { %v1191_v46 = vsel %vm3261_vm6, %v1085_v34, %v1190_v44 }
 0x1e6   : > { %v1100_v59 = vrot.slane %v1099_v51, 2  ;;  %v1106_v60 = vrot.slane %v1105_v52, 2  ;;  %v1192_v50 = vsel %vm3260_vm7, %v1097_v36, %v1191_v46 }
 0x1e7   : > { %v982_v1 = vpop.f32.mrf.mxu2  ;;  %v1023_v2 = vpop.f32.mrf.mxu3 }
 0x1e8   : > { %v983_v5 = vadd.f32 %v982_v1, %v2630_v6  ;;  %v1024_v8 = vadd.f32 %v1023_v2, %v2632_v7  ;;  %v1101_v11 = vmax.f32 %v1099_v51, %v1100_v59  ;;  %v1107_v12 = vmax.f32 %v1105_v52, %v1106_v60  ;;  %v1403_v59 = vld [vmem:[%s3234_s11 + $0x60] sm:$0xff]  ;;  %v1402_v60 = vld [vmem:[%s3234_s11 + $0x58] sm:$0xff]  ;;  %v1397_v2 = vld [vmem:[%s3234_s11 + $0x30] sm:$0xff] }
 0x1e9   : > { %v1090_v6 = vrot.slane %v1089_v3, 1  ;;  %1414 = vmatpush.msra.mxu0 %v1403_v59  ;;  %v1723_v1 = vld [vmem:[%s3238_s15 + $0x38] sm:$0xff] }
 0x1ea   : > { %v1110_v15 = vrot.slane %v983_v5, 4  ;;  %v1116_v16 = vrot.slane %v1024_v8, 4  ;;  %1306 = vmatmul.f32.gmra.mxu2 %v983_v5  ;;  %1347 = vmatmul.f32.gmra.mxu3 %v1024_v8  ;;  %v1102_v24 = vrot.slane %v1101_v11, 1  ;;  %v1108_v25 = vrot.slane %v1107_v12, 1 }
 0x1eb   : > { %v1091_v35 = vmax.f32 %v1089_v3, %v1090_v6  ;;  %1415 = vmatpush.msra.mxu0 %v1402_v60  ;;  %v1396_v3 = vld [vmem:[%s3234_s11 + $0x28] sm:$0xff] }
 0x1ec   : > { %v1111_v7 = vmax.f32 %v983_v5, %v1110_v15  ;;  %v1117_v21 = vmax.f32 %v1024_v8, %v1116_v16  ;;  %v1103_v29 = vmax.f32 %v1101_v11, %v1102_v24  ;;  %v1109_v30 = vmax.f32 %v1107_v12, %v1108_v25  ;;  %v1395_v5 = vld [vmem:[%s3234_s11 + $0x20] sm:$0xff]  ;;  %v1721_v8 = vld [vmem:[%s3238_s15 + $0x28] sm:$0xff]  ;;  %v1393_v11 = vld [vmem:[%s3234_s11 + $0x10] sm:$0xff] }
 0x1ed   : > { %v1183_v48 = vsel %vm3260_vm7, %v1091_v35, %v1181_v45  ;;  %1416 = vmatpush.msra.mxu0 %v1401_v61  ;;  %v1719_v12 = vld [vmem:[%s3238_s15 + $0x18] sm:$0xff]  ;;  %v1391_v15 = vld [vmem:[%s3234_s11] sm:$0xff]  ;;  %v1717_v16 = vld [vmem:[%s3238_s15 + $0x8] sm:$0xff] }
 0x1ee   : > { %v1112_v28 = vrot.slane %v1111_v7, 2  ;;  %v1118_v31 = vrot.slane %v1117_v21, 2  ;;  %v1185_v51 = vsel %vm3259_vm8, %v1103_v29, %v1183_v48  ;;  %v1193_v52 = vsel %vm3259_vm8, %v1109_v30, %v1192_v50 }
 0x1ef   : > { %1417 = vmatpush.msra.mxu0 %v1400_v62 }
 0x1f0   : > { %v1113_v37 = vmax.f32 %v1111_v7, %v1112_v28  ;;  %v1119_v38 = vmax.f32 %v1117_v21, %v1118_v31  ;;  %v2088_v7 = vld [vmem:[%s3233_s10] ss:$0 sm:$0xff] }
 0x1f1   : > { %1418 = vmatpush.msra.mxu0 %v1399_v63  ;;  %v1765_v63 = vld [vmem:[%s3240_s17 + $0x68] sm:$0xff] }
 0x1f2   : > { %v1114_v39 = vrot.slane %v1113_v37, 1  ;;  %v1120_v40 = vrot.slane %v1119_v38, 1 }
 0x1f3   : > { %1419 = vmatpush.msra.mxu0 %v1398_v0  ;;  %v1764_v0 = vld [vmem:[%s3240_s17 + $0x60] sm:$0xff] }
 0x1f4   : > { %v1115_v47 = vmax.f32 %v1113_v37, %v1114_v39  ;;  %v1121_v49 = vmax.f32 %v1119_v38, %v1120_v40 }
 0x1f5   : > { %1420 = vmatpush.msra.mxu0 %v1397_v2 }
 0x1f6   : > { %v1187_v53 = vsel %vm3258_vm9, %v1115_v47, %v1185_v51  ;;  %v1194_v54 = vsel %vm3258_vm9, %v1121_v49, %v1193_v52 }
 0x1f7   : > { %1213 = vmatmul.f32.vlgmr.msrb.gmra.mxu0 %v1187_v53  ;;  %1233 = vmatmul.f32.vlgmr.msrb.gmra.mxu1 %v1194_v54 }
 0x1f8   : > { %1739 = vmatpush.msrb.mxu1 %v1723_v1  ;;  %1421 = vmatpush.msra.mxu0 %v1396_v3  ;;  %v1763_v3 = vld [vmem:[%s3240_s17 + $0x58] sm:$0xff] }
 0x1fa   : > { %1740 = vmatpush.msrb.mxu1 %v1722_v4  ;;  %1422 = vmatpush.msra.mxu0 %v1395_v5  ;;  %v1762_v5 = vld [vmem:[%s3240_s17 + $0x50] sm:$0xff] }
 0x1fc   : > { %1741 = vmatpush.msrb.mxu1 %v1721_v8  ;;  %1423 = vmatpush.msra.mxu0 %v1394_v9 }
 0x1fe   : > { %1742 = vmatpush.msrb.mxu1 %v1720_v10  ;;  %1424 = vmatpush.msra.mxu0 %v1393_v11  ;;  %v1761_v10 = vld [vmem:[%s3240_s17 + $0x48] sm:$0xff] }
 0x1ff   : > { %2037 = vmatmul.msk.f32.vlgmr.msra.gmra.mxu1 %vm742_vm1, %v736_v55 }
 0x200   : > { %1743 = vmatpush.msrb.mxu1 %v1719_v12  ;;  %1425 = vmatpush.msra.mxu0 %v1392_v13  ;;  %v1760_v13 = vld [vmem:[%s3240_s17 + $0x40] sm:$0xff] }
 0x202   : > { %1744 = vmatpush.msrb.mxu1 %v1718_v14  ;;  %1426 = vmatpush.msra.mxu0 %v1391_v15 }
 0x204   : > { %1745 = vmatpush.msrb.mxu1 %v1717_v16  ;;  %v1759_v16 = vld [vmem:[%s3240_s17 + $0x38] sm:$0xff] }
 0x206   : > { %1746 = vmatpush.msrb.mxu1 %v1716_v17 }
 0x208   : > { %1772 = vmatpush.msra.mxu1 %v1767_v57 }
 0x20a   : > { %1773 = vmatpush.msra.mxu1 %v1766_v58 }
 0x20c   : > { %1774 = vmatpush.msra.mxu1 %v1765_v63  ;;  %v1799_v63 = vld [vmem:[%s3242_s19 + $0x30] sm:$0xff] }
 0x20e   : > { %1775 = vmatpush.msra.mxu1 %v1764_v0 }
 0x210   : > { %1776 = vmatpush.msra.mxu1 %v1763_v3  ;;  %v1798_v3 = vld [vmem:[%s3242_s19 + $0x28] sm:$0xff] }
 0x212   : > { %1777 = vmatpush.msra.mxu1 %v1762_v5 }
 0x214   : > { %1778 = vmatpush.msra.mxu1 %v1761_v10  ;;  %v1797_v10 = vld [vmem:[%s3242_s19 + $0x20] sm:$0xff] }
 0x216   : > { %1779 = vmatpush.msra.mxu1 %v1760_v13 }
 0x218   : > { %1780 = vmatpush.msra.mxu1 %v1759_v16 }
 0x235   : > { %v1286_v18 = vpop.f32.mrf.mxu2  ;;  %v1327_v19 = vpop.f32.mrf.mxu3 }
 0x236   : > { %v1328_v25 = vadd.f32 %v1327_v19, %v1286_v18  ;;  %v1758_v18 = vld [vmem:[%s3240_s17 + $0x30] sm:$0xff] }
 0x237   : > { %1781 = vmatpush.msra.mxu1 %v1758_v18 }
 0x23d   : > { %v1289_v6 = vpop.f32.mrf.mxu2  ;;  %v1330_v20 = vpop.f32.mrf.mxu3 }
 0x23e   : > { %v1331_v38 = vadd.f32 %v1330_v20, %v1289_v6  ;;  %v1757_v20 = vld [vmem:[%s3240_s17 + $0x28] sm:$0xff] }
 0x23f   : > { %1782 = vmatpush.msra.mxu1 %v1757_v20 }
 0x245   : > { %v1292_v31 = vpop.f32.mrf.mxu2  ;;  %v1333_v32 = vpop.f32.mrf.mxu3 }
 0x246   : > { %v1334_v44 = vadd.f32 %v1333_v32, %v1292_v31  ;;  %v1754_v31 = vld [vmem:[%s3240_s17 + $0x10] sm:$0xff]  ;;  %v1753_v32 = vld [vmem:[%s3240_s17 + $0x8] sm:$0xff] }
 0x24d   : > { %v1295_v42 = vpop.f32.mrf.mxu2  ;;  %v1336_v39 = vpop.f32.mrf.mxu3 }
 0x24e   : > { %v1337_v51 = vadd.f32 %v1336_v39, %v1295_v42  ;;  %v2090_v42 = vld [vmem:[%s3235_s12] ss:$0 sm:$0xff] }
 0x255   : > { %v1298_v49 = vpop.f32.mrf.mxu2  ;;  %v1339_v50 = vpop.f32.mrf.mxu3 }
 0x256   : > { %v1340_v56 = vadd.f32 %v1339_v50, %v1298_v49 }
 0x25d   : > { %v1301_v59 = vpop.f32.mrf.mxu2  ;;  %v1342_v60 = vpop.f32.mrf.mxu3 }
 0x25e   : > { %v1343_v4 = vadd.f32 %v1342_v60, %v1301_v59 }
 0x265   : > { %v1304_v11 = vpop.f32.mrf.mxu2  ;;  %v1345_v12 = vpop.f32.mrf.mxu3 }
 0x266   : > { %v1346_v17 = vadd.f32 %v1345_v12, %v1304_v11 }
 0x274   : > { %v1214_v21 = vpop.f32.mrf.mxu0  ;;  %v1234_v22 = vpop.f32.mrf.mxu1 }
 0x275   : > { %v1215_v23 = vadd.f32 %v2088_v7, %v1214_v21  ;;  %v1756_v7 = vld [vmem:[%s3240_s17 + $0x20] sm:$0xff]  ;;  %v1307_v21 = vpop.f32.mrf.mxu2 }
 0x276   : > { %1783 = vmatpush.msra.mxu1 %v1756_v7 }
 0x277   : > { %v2881_v24 = vadd.f32 %v1234_v22, %v1215_v23  ;;  %v1348_v22 = vpop.f32.mrf.mxu3 }
 0x279   : > { %v1359_v27 = vperm.slane %v2881_v24, 0  ;;  %v1352_v28 = vrot.slane %v2881_v24, 1  ;;  %v1353_v30 = vrot.slane %v2881_v24, 2  ;;  %v1354_v46 = vrot.slane %v2881_v24, 3 }
 0x27a   : > { %v1355_v53 = vrot.slane %v2881_v24, 4  ;;  %v1356_v62 = vrot.slane %v2881_v24, 5  ;;  %v1357_v9 = vrot.slane %v2881_v24, 6  ;;  %v1358_v6 = vrot.slane %v2881_v24, 7  ;;  %v1755_v24 = vld [vmem:[%s3240_s17 + $0x18] sm:$0xff] }
 0x27b   : > { %v1375_v33 = vadd.f32 %v1359_v27, %v1328_v25  ;;  %v1360_v37 = vperm.slane %v1352_v28, 0  ;;  %v1361_v40 = vperm.slane %v1353_v30, 0  ;;  %v1362_v48 = vperm.slane %v1354_v46, 0  ;;  %1784 = vmatpush.msra.mxu1 %v1755_v24 }
 0x27c   : > { %v1712_v34 = vpop.f32.mrf.mxu1  ;;  %v1363_v55 = vperm.slane %v1355_v53, 0  ;;  %v1364_v2 = vperm.slane %v1356_v62, 0  ;;  %v1365_v15 = vperm.slane %v1357_v9, 0  ;;  %v1366_v25 = vperm.slane %v1358_v6, 0  ;;  %v1800_v62 = vld [vmem:[%s3242_s19 + $0x38] sm:$0xff] }
 0x27d   : > { %v1713_v35 = vadd.f32 %v2089_v26, %v1712_v34  ;;  %v1383_v36 = vmax.f32 %v1375_v33, 0.0  ;;  %v1376_v41 = vadd.f32 %v1360_v37, %v1331_v38  ;;  %v1377_v45 = vadd.f32 %v1361_v40, %v1334_v44  ;;  %1785 = vmatpush.msra.mxu1 %v1754_v31  ;;  %v1752_v33 = vld [vmem:[%s3240_s17] sm:$0xff] }
 0x27e   : > { %v1378_v52 = vadd.f32 %v1362_v48, %v1337_v51  ;;  %v1379_v61 = vadd.f32 %v1363_v55, %v1340_v56  ;;  %v1380_v8 = vadd.f32 %v1364_v2, %v1343_v4  ;;  %v1381_v19 = vadd.f32 %v1365_v15, %v1346_v17  ;;  %v2091_v34 = vld [vmem:[%s3239_s16] ss:$0 sm:$0xff]  ;;  %v1796_v15 = vld [vmem:[%s3242_s19 + $0x18] sm:$0xff] }
 0x27f   : > { %v1715_v29 = vmax.f32 %v1713_v35, 0.0  ;;  %1427 = vmatmul.f32.vlgmr.msra.gmra.mxu0 %v1383_v36  ;;  %v1384_v43 = vmax.f32 %v1376_v41, 0.0  ;;  %v1385_v47 = vmax.f32 %v1377_v45, 0.0  ;;  %v1349_v26 = vadd.f32 %v1348_v22, %v1307_v21  ;;  %1786 = vmatpush.msra.mxu1 %v1753_v32 }
 0x280   : > { %v1386_v54 = vmax.f32 %v1378_v52, 0.0  ;;  %v1387_v1 = vmax.f32 %v1379_v61, 0.0  ;;  %v1388_v14 = vmax.f32 %v1380_v8, 0.0  ;;  %v1389_v23 = vmax.f32 %v1381_v19, 0.0 }
 0x281   : > { %2038 = vmatmul.msk.f32.vlgmr.msrb.gmra.mxu1 %vm832_vm2, %v1715_v29  ;;  %v1382_v27 = vadd.f32 %v1366_v25, %v1349_v26 }
 0x282   : > { %1787 = vmatpush.msra.mxu1 %v1752_v33 }
 0x283   : > { %v1390_v28 = vmax.f32 %v1382_v27, 0.0 }
 0x284   : > { %1816 = vmatpush.msrb.mxu1 %v1800_v62 }
 0x286   : > { %1817 = vmatpush.msrb.mxu1 %v1799_v63 }
 0x287   : > { %1430 = vmatmul.f32.gmra.mxu0 %v1384_v43 }
 0x288   : > { %1818 = vmatpush.msrb.mxu1 %v1798_v3  ;;  %v1794_v3 = vld [vmem:[%s3242_s19 + $0x8] sm:$0xff] }
 0x28a   : > { %1819 = vmatpush.msrb.mxu1 %v1797_v10 }
 0x28c   : > { %1820 = vmatpush.msrb.mxu1 %v1796_v15 }
 0x28f   : > { %1433 = vmatmul.f32.gmra.mxu0 %v1385_v47 }
 0x297   : > { %1436 = vmatmul.f32.gmra.mxu0 %v1386_v54 }
 0x29f   : > { %1439 = vmatmul.f32.gmra.mxu0 %v1387_v1 }
 0x2a7   : > { %1442 = vmatmul.f32.gmra.mxu0 %v1388_v14 }
 0x2af   : > { %1445 = vmatmul.f32.gmra.mxu0 %v1389_v23 }
 0x2b7   : > { %1448 = vmatmul.f32.gmra.mxu0 %v1390_v28 }
 0x2fc   : > { %v1428_v35 = vpop.f32.mrf.mxu0 }
 0x2fd   : > { %v1429_v44 = vadd.f32 %v2090_v42, %v1428_v35 }
 0x2fe   : > { %v1748_v36 = vpop.f32.mrf.mxu1 }
 0x2ff   : > { %v1749_v37 = vadd.f32 %v2091_v34, %v1748_v36  ;;  %v1452_v49 = vsel %vm832_vm2, %v1429_v44, -inf }
 0x300   : > { %v1453_v56 = vrot.slane %v1452_v49, 4 }
 0x301   : > { %v1751_v38 = vmax.f32 %v1749_v37, 0.0 }
 0x302   : > { %v1454_v1 = vmax.f32 %v1452_v49, %v1453_v56 }
 0x303   : > { %1788 = vmatmul.f32.vlgmr.msra.gmra.mxu1 %v1751_v38 }
 0x304   : > { %v1431_v29 = vpop.f32.mrf.mxu0  ;;  %v1455_v13 = vrot.slane %v1454_v1, 2 }
 0x305   : > { %v1432_v43 = vadd.f32 %v2090_v42, %v1431_v29 }
 0x306   : > { %v1456_v7 = vmax.f32 %v1454_v1, %v1455_v13 }
 0x307   : > { %v1459_v47 = vsel %vm832_vm2, %v1432_v43, -inf }
 0x308   : > { %v1460_v51 = vrot.slane %v1459_v47, 4  ;;  %v1457_v32 = vrot.slane %v1456_v7, 1 }
 0x30a   : > { %v1461_v60 = vmax.f32 %v1459_v47, %v1460_v51 }
 0x30c   : > { %v1434_v41 = vpop.f32.mrf.mxu0  ;;  %v1462_v5 = vrot.slane %v1461_v60, 2 }
 0x30d   : > { %v1435_v40 = vadd.f32 %v2090_v42, %v1434_v41 }
 0x30e   : > { %v1463_v18 = vmax.f32 %v1461_v60, %v1462_v5  ;;  %v2092_v5 = vld [vmem:[%s3241_s18] ss:$0 sm:$0xff] }
 0x30f   : > { %v1466_v48 = vsel %vm832_vm2, %v1435_v40, -inf }
 0x310   : > { %v1467_v54 = vrot.slane %v1466_v48, 4  ;;  %v1464_v25 = vrot.slane %v1463_v18, 1 }
 0x312   : > { %v1468_v0 = vmax.f32 %v1466_v48, %v1467_v54  ;;  %v2972_v37 = vmax.f32 %v1463_v18, %v1464_v25 }
 0x314   : > { %v1437_v30 = vpop.f32.mrf.mxu0  ;;  %v1469_v11 = vrot.slane %v1468_v0, 2 }
 0x315   : > { %v1438_v45 = vadd.f32 %v2090_v42, %v1437_v30 }
 0x316   : > { %v1470_v20 = vmax.f32 %v1468_v0, %v1469_v11 }
 0x317   : > { %v1473_v50 = vsel %vm832_vm2, %v1438_v45, -inf }
 0x318   : > { %v1474_v57 = vrot.slane %v1473_v50, 4  ;;  %v1471_v24 = vrot.slane %v1470_v20, 1 }
 0x31a   : > { %v1475_v2 = vmax.f32 %v1473_v50, %v1474_v57  ;;  %v2974_v41 = vmax.f32 %v1470_v20, %v1471_v24 }
 0x31c   : > { %v1440_v39 = vpop.f32.mrf.mxu0  ;;  %v1476_v14 = vrot.slane %v1475_v2, 2  ;;  %v1510_v47 = vmul.f32 %v2974_v41, %v2974_v41 }
 0x31d   : > { %v1441_v46 = vadd.f32 %v2090_v42, %v1440_v39  ;;  %v2976_v39 = vmax.f32 %v1456_v7, %v1457_v32 }
 0x31e   : > { %v1477_v21 = vmax.f32 %v1475_v2, %v1476_v14  ;;  %v1795_v2 = vld [vmem:[%s3242_s19 + $0x10] sm:$0xff] }
 0x31f   : > { %v1480_v52 = vsel %vm832_vm2, %v1441_v46, -inf  ;;  %v1508_v49 = vmul.f32 %v2976_v39, %v2976_v39  ;;  %1821 = vmatpush.msrb.mxu1 %v1795_v2 }
 0x320   : > { %v1481_v58 = vrot.slane %v1480_v52, 4  ;;  %v1478_v33 = vrot.slane %v1477_v21, 1 }
 0x321   : > { %1822 = vmatpush.msrb.mxu1 %v1794_v3 }
 0x322   : > { %v1482_v4 = vmax.f32 %v1480_v52, %v1481_v58  ;;  %v2978_v43 = vmax.f32 %v1477_v21, %v1478_v33 }
 0x324   : > { %v1443_v53 = vpop.f32.mrf.mxu0  ;;  %v1483_v16 = vrot.slane %v1482_v4, 2  ;;  %v1511_v50 = vmul.f32 %v2978_v43, %v2978_v43 }
 0x325   : > { %v1444_v55 = vadd.f32 %v2090_v42, %v1443_v53 }
 0x326   : > { %v1484_v23 = vmax.f32 %v1482_v4, %v1483_v16  ;;  %v1793_v4 = vld [vmem:[%s3242_s19] sm:$0xff] }
 0x327   : > { %v1487_v59 = vsel %vm832_vm2, %v1444_v55, -inf  ;;  %1823 = vmatpush.msrb.mxu1 %v1793_v4 }
 0x328   : > { %v1488_v61 = vrot.slane %v1487_v59, 4  ;;  %v1485_v35 = vrot.slane %v1484_v23, 1 }
 0x32a   : > { %v1489_v8 = vmax.f32 %v1487_v59, %v1488_v61  ;;  %v2980_v44 = vmax.f32 %v1484_v23, %v1485_v35 }
 0x32c   : > { %v1446_v9 = vpop.f32.mrf.mxu0  ;;  %v1490_v19 = vrot.slane %v1489_v8, 2  ;;  %v1512_v52 = vmul.f32 %v2980_v44, %v2980_v44 }
 0x32d   : > { %v1447_v12 = vadd.f32 %v2090_v42, %v1446_v9 }
 0x32e   : > { %v1491_v26 = vmax.f32 %v1489_v8, %v1490_v19 }
 0x32f   : > { %v1494_v17 = vsel %vm832_vm2, %v1447_v12, -inf }
 0x330   : > { %v1495_v6 = vrot.slane %v1494_v17, 4  ;;  %v1492_v38 = vrot.slane %v1491_v26, 1 }
 0x332   : > { %v1496_v22 = vmax.f32 %v1494_v17, %v1495_v6  ;;  %v2984_v45 = vmax.f32 %v1491_v26, %v1492_v38 }
 0x334   : > { %v1497_v27 = vrot.slane %v1496_v22, 2  ;;  %v1449_v28 = vpop.f32.mrf.mxu0  ;;  %v1513_v54 = vmul.f32 %v2984_v45, %v2984_v45 }
 0x335   : > { %v1450_v31 = vadd.f32 %v2090_v42, %v1449_v28  ;;  %v1509_v42 = vmul.f32 %v2972_v37, %v2972_v37 }
 0x336   : > { %v1498_v34 = vmax.f32 %v1496_v22, %v1497_v27 }
 0x337   : > { %v1501_v36 = vsel %vm832_vm2, %v1450_v31, -inf  ;;  %v1524_v53 = vsel %vm1174_vm3, %v1509_v42, %v1508_v49 }
 0x338   : > { %v1502_v29 = vrot.slane %v1501_v36, 4  ;;  %v1499_v30 = vrot.slane %v1498_v34, 1  ;;  %v1525_v57 = vsel %vm3263_vm4, %v1510_v47, %v1524_v53 }
 0x339   : > { %v1526_v59 = vsel %vm3262_vm5, %v1511_v50, %v1525_v57 }
 0x33a   : > { %v1503_v40 = vmax.f32 %v1501_v36, %v1502_v29  ;;  %v2988_v48 = vmax.f32 %v1498_v34, %v1499_v30  ;;  %v1527_v60 = vsel %vm3261_vm6, %v1512_v52, %v1526_v59 }
 0x33b   : > { %v1528_v62 = vsel %vm3260_vm7, %v1513_v54, %v1527_v60 }
 0x33c   : > { %v1504_v46 = vrot.slane %v1503_v40, 2  ;;  %v1514_v56 = vmul.f32 %v2988_v48, %v2988_v48 }
 0x33e   : > { %v1505_v51 = vmax.f32 %v1503_v40, %v1504_v46  ;;  %v1529_v63 = vsel %vm3259_vm8, %v1514_v56, %v1528_v62 }
 0x340   : > { %v1506_v55 = vrot.slane %v1505_v51, 1 }
 0x342   : > { %v3002_v58 = vmax.f32 %v1505_v51, %v1506_v55 }
 0x344   : > { %v1515_v61 = vmul.f32 %v3002_v58, %v3002_v58 }
 0x346   : > { %v1530_v0 = vsel %vm3258_vm9, %v1515_v61, %v1529_v63  ;;  %v1832_v63 = vld [vmem:[%s3244_s21 + $0x18] sm:$0xff] }
 0x347   : > { %v1532_v1 = vsel %vm832_vm2, %v1530_v0, 0.0  ;;  %v1831_v0 = vld [vmem:[%s3244_s21 + $0x10] sm:$0xff]  ;;  %1853 = vmatpush.msra.mxu1 %v1832_v63 }
 0x348   : > { %1533 = vadd.xlane.f32.xlu0 %v1532_v1 }
 0x349   : > { %1854 = vmatpush.msra.mxu1 %v1831_v0 }
 0x380   : > { %v1789_v8 = vpop.f32.mrf.mxu1 }
 0x381   : > { %v1790_v9 = vadd.f32 %v2092_v5, %v1789_v8 }
 0x383   : > { %v1792_v10 = vmax.f32 %v1790_v9, 0.0 }
 0x385   : > { %2039 = vmatmul.msk.f32.vlgmr.msrb.gmra.mxu1 %vm832_vm2, %v1792_v10 }
 0x3bb   : > { %v1534_v11 = vpop.xlane.xlu0 %1533 }
 0x3bc   : > { %2095 = vrsqrt.f32 %v1534_v11  ;;  %vm1542_vm10 = vcmp.eq.f32.partialorder %v1534_v11, inf  ;;  %v1545_v19 = vand.u32 2147483648, %v1534_v11  ;;  %vm1544_vm11 = vcmp.eq.f32.partialorder %v1534_v11, 0.0 }
 0x3c2   : > { %v2096_v12 = vpop.eup %2095 }
 0x3c3   : > { %v1536_v13 = vmul.f32 %v2096_v12, %v1534_v11 }
 0x3c5   : > { %v1537_v14 = vmul.f32 %v2096_v12, %v1536_v13 }
 0x3c7   : > { %v1538_v15 = vmul.f32 0.5, %v1537_v14 }
 0x3c9   : > { %v1539_v16 = vsub.f32 1.5, %v1538_v15 }
 0x3cb   : > { %v1540_v17 = vmul.f32 %v2096_v12, %v1539_v16 }
 0x3cd   : > { %v1541_v18 = vmul.f32 %v1540_v17, %v1534_v11 }
 0x3cf   : > { %v1543_v6 = vsel %vm1542_vm10, %v1534_v11, %v1541_v18 }
 0x3d0   : > { %v1546_v20 = vsel %vm1544_vm11, %v1545_v19, %v1543_v6 }
 0x3d1   : > { %v1547_v7 = vmax.f32 %v1546_v20, 1e-12 }
 0x3d3   : > { %v3025_v21 = vrot.slane %v1547_v7, 1  ;;  %v3027_v22 = vrot.slane %v1547_v7, 2  ;;  %v3029_v23 = vrot.slane %v1547_v7, 3  ;;  %2097 = vrcp.f32 %v1547_v7 }
 0x3d4   : > { %v3032_v25 = vrot.slane %v1547_v7, 4  ;;  %v1575_v26 = vand.u32 2147483648, %v1547_v7  ;;  %v3038_v24 = vrot.slane %v1547_v7, 5  ;;  %v3040_v31 = vrot.slane %v1547_v7, 6 }
 0x3d5   : > { %2099 = vrcp.f32 %v3025_v21  ;;  %v1588_v27 = vand.u32 2147483647, %v3025_v21  ;;  %v1590_v28 = vand.u32 2147483648, %v3025_v21  ;;  %v3042_v32 = vrot.slane %v1547_v7, 7 }
 0x3d6   : > { %2101 = vrcp.f32 %v3027_v22  ;;  %v1603_v33 = vand.u32 2147483647, %v3027_v22  ;;  %vm1569_vm12 = vweird.f32 %v1547_v7  ;;  %v1573_v35 = vand.u32 2147483647, %v1547_v7 }
 0x3d7   : > { %2103 = vrcp.f32 %v3029_v23  ;;  %v1605_v36 = vand.u32 2147483648, %v3027_v22  ;;  %v3050_v30 = vor.u32 1.1754944e-38, %v1575_v26  ;;  %vm1584_vm13 = vweird.f32 %v3025_v21 }
 0x3d8   : > { %2105 = vrcp.f32 %v3032_v25  ;;  %vm1599_vm14 = vweird.f32 %v3027_v22  ;;  %vm3055_vm15 = vcmp.eq.f32.partialorder %v1588_v27, 8.507059e+37  ;;  %v1591_v47 = vor.u32 1.1754944e-38, %v1590_v28 }
 0x3d9   : > { %v3045_v34 = vpop.eup %2097  ;;  %v1618_v49 = vand.u32 2147483647, %v3029_v23  ;;  %vm3061_vm0 = vcmp.eq.f32.partialorder %v1603_v33, 8.507059e+37  ;;  %vm1614_vm1 = vweird.f32 %v3029_v23  ;;  %v1620_v53 = vand.u32 2147483648, %v3029_v23  ;;  %v1830_v33 = vld [vmem:[%s3244_s21 + $0x8] sm:$0xff] }
 0x3da   : > { %v1565_v29 = vmul.f32 %v3045_v34, %v1547_v7  ;;  %2107 = vrcp.f32 %v3038_v24  ;;  %vm1570_vm2 = vweird.f32 %v3045_v34  ;;  %vm3069_vm10 = vcmp.eq.f32.partialorder %v1573_v35, 8.507059e+37  ;;  %1855 = vmatpush.msra.mxu1 %v1830_v33 }
 0x3db   : > { %v2100_v38 = vpop.eup %2099  ;;  %v1606_v57 = vor.u32 1.1754944e-38, %v1605_v36  ;;  %v1633_v59 = vand.u32 2147483647, %v3032_v25  ;;  %v1635_v3 = vand.u32 2147483648, %v3032_v25  ;;  %2109 = vrcp.f32 %v3040_v31  ;;  %vm3092_vm8 = vmor %vm1569_vm12, %vm1570_vm2 }
 0x3dc   : > { %v2102_v40 = vpop.eup %2101  ;;  %v1580_v42 = vmul.f32 %v2100_v38, %v3025_v21  ;;  %v1566_v50 = vsub.f32 1.0, %v1565_v29  ;;  %vm1585_vm11 = vweird.f32 %v2100_v38  ;;  %vm3096_vm7 = vcmp.eq.f32.partialorder %v1618_v49, 8.507059e+37 }
 0x3dd   : > { %v1595_v51 = vmul.f32 %v2102_v40, %v3027_v22  ;;  %v2104_v54 = vpop.eup %2103  ;;  %vm1600_vm9 = vweird.f32 %v2102_v40  ;;  %v1621_v13 = vor.u32 1.1754944e-38, %v1620_v53  ;;  %vm1629_vm6 = vweird.f32 %v3032_v25  ;;  %vm1586_vm5 = vmor %vm1584_vm13, %vm1585_vm11  ;;  %v1829_v22 = vld [vmem:[%s3244_s21] sm:$0xff] }
 0x3de   : > { %v1581_v56 = vsub.f32 1.0, %v1580_v42  ;;  %v1567_v60 = vmul.f32 %v3045_v34, %v1566_v50  ;;  %v1610_v62 = vmul.f32 %v2104_v54, %v3029_v23  ;;  %v3082_v1 = vpop.eup %2105  ;;  %vm1615_vm12 = vweird.f32 %v2104_v54  ;;  %vm1601_vm4 = vmor %vm1599_vm14, %vm1600_vm9  ;;  %1856 = vmatpush.msra.mxu1 %v1829_v22 }
 0x3df   : > { %v1596_v61 = vsub.f32 1.0, %v1595_v51  ;;  %v1625_v9 = vmul.f32 %v3082_v1, %v3032_v25  ;;  %vm3106_vm2 = vcmp.eq.f32.partialorder %v1633_v59, 8.507059e+37  ;;  %v1636_v20 = vor.u32 1.1754944e-38, %v1635_v3 }
 0x3e0   : > { %v1582_v2 = vmul.f32 %v2100_v38, %v1581_v56  ;;  %v1568_v4 = vadd.f32 %v3045_v34, %v1567_v60  ;;  %v1611_v8 = vsub.f32 1.0, %v1610_v62  ;;  %v3101_v14 = vpop.eup %2107  ;;  %v1650_v28 = vand.u32 2147483648, %v3038_v24 }
 0x3e1   : > { %v1597_v5 = vmul.f32 %v2102_v40, %v1596_v61  ;;  %v1626_v17 = vsub.f32 1.0, %v1625_v9  ;;  %v1640_v7 = vmul.f32 %v3101_v14, %v3038_v24  ;;  %vm1644_vm13 = vweird.f32 %v3038_v24 }
 0x3e2   : > { %v1583_v11 = vadd.f32 %v2100_v38, %v1582_v2  ;;  %v1612_v16 = vmul.f32 %v2104_v54, %v1611_v8  ;;  %v1572_v19 = vsel %vm3092_vm8, %v3045_v34, %v1568_v4  ;;  %v2110_v34 = vpop.eup %2109  ;;  %vm1645_vm8 = vweird.f32 %v3101_v14 }
 0x3e3   : > { %v1598_v15 = vadd.f32 %v2102_v40, %v1597_v5  ;;  %v1627_v36 = vmul.f32 %v3082_v1, %v1626_v17  ;;  %v1577_v29 = vsel %vm3069_vm10, %v3050_v30, %v1572_v19  ;;  %v1655_v42 = vmul.f32 %v2110_v34, %v3040_v31 }
 0x3e4   : > { %v1587_v6 = vsel %vm1586_vm5, %v2100_v38, %v1583_v11  ;;  %v1613_v27 = vadd.f32 %v2104_v54, %v1612_v16  ;;  %vm1616_vm5 = vmor %vm1614_vm1, %vm1615_vm12  ;;  %v1641_v38 = vsub.f32 1.0, %v1640_v7  ;;  %2111 = vrcp.f32 %v3042_v32 }
 0x3e5   : > { %v1592_v21 = vsel %vm3055_vm15, %v1591_v47, %v1587_v6  ;;  %v1602_v26 = vsel %vm1601_vm4, %v2102_v40, %v1598_v15  ;;  %vm1630_vm4 = vweird.f32 %v3082_v1  ;;  %v1628_v47 = vadd.f32 %v3082_v1, %v1627_v36 }
 0x3e6   : > { %v1607_v35 = vsel %vm3061_vm0, %v1606_v57, %v1602_v26  ;;  %v1617_v40 = vsel %vm1616_vm5, %v2104_v54, %v1613_v27  ;;  %v1593_v46 = vmul.f32 %v1592_v21, %v2972_v37  ;;  %v1642_v49 = vmul.f32 %v3101_v14, %v1641_v38  ;;  %vm1631_vm9 = vmor %vm1629_vm6, %vm1630_vm4 }
 0x3e7   : > { %v1622_v23 = vsel %vm3096_vm7, %v1621_v13, %v1617_v40  ;;  %v1608_v50 = vmul.f32 %v1607_v35, %v2974_v41  ;;  %v1656_v30 = vsub.f32 1.0, %v1655_v42  ;;  %v1632_v37 = vsel %vm1631_vm9, %v3082_v1, %v1628_v47  ;;  %vm3156_vm7 = vmor %vm1644_vm13, %vm1645_vm8 }
 0x3e8   : > { %v1643_v51 = vadd.f32 %v3101_v14, %v1642_v49  ;;  %v1648_v52 = vand.u32 2147483647, %v3038_v24  ;;  %v1651_v53 = vor.u32 1.1754944e-38, %v1650_v28  ;;  %v1578_v54 = vmul.f32 %v1577_v29, %v2976_v39 }
 0x3e9   : > { %v1623_v55 = vmul.f32 %v1622_v23, %v2978_v43  ;;  %v1657_v25 = vmul.f32 %v2110_v34, %v1656_v30  ;;  %vm1660_vm6 = vweird.f32 %v2110_v34  ;;  %v1637_v56 = vsel %vm3106_vm2, %v1636_v20, %v1632_v37 }
 0x3ea   : > { %v1647_v24 = vsel %vm3156_vm7, %v3101_v14, %v1643_v51  ;;  %v1665_v57 = vand.u32 2147483648, %v3040_v31  ;;  %v1903_v39 = vrot.slane %v1593_v46, 7  ;;  %vm1659_vm14 = vweird.f32 %v3040_v31  ;;  %v2112_v62 = vpop.eup %2111 }
 0x3eb   : > { %v1658_v59 = vadd.f32 %v2110_v34, %v1657_v25  ;;  %v1663_v43 = vand.u32 2147483647, %v3040_v31  ;;  %v1905_v60 = vrot.slane %v1608_v50, 6  ;;  %vm1649_vm15 = vcmp.eq.f32.partialorder %v1648_v52, 8.507059e+37  ;;  %vm1661_vm0 = vmor %vm1659_vm14, %vm1660_vm6 }
 0x3ec   : > { %v1904_v61 = vsel %vm1174_vm3, %v1903_v39, %v1578_v54  ;;  %v1638_v63 = vmul.f32 %v1637_v56, %v2980_v44  ;;  %v1652_v0 = vsel %vm1649_vm15, %v1651_v53, %v1647_v24  ;;  %vm3308_vm1 = vcmask 1042434  }
 0x3ed   : > { %v1662_v1 = vsel %vm1661_vm0, %v2110_v34, %v1658_v59  ;;  %v1906_v2 = vsel %vm3308_vm1, %v1905_v60, %v1904_v61  ;;  %v1666_v3 = vor.u32 1.1754944e-38, %v1665_v57  ;;  %v1670_v4 = vmul.f32 %v2112_v62, %v3042_v32 }
 0x3ee   : > { %v1907_v5 = vrot.slane %v1623_v55, 5  ;;  %vm1664_vm10 = vcmp.eq.f32.partialorder %v1663_v43, 8.507059e+37  ;;  %v1653_v8 = vmul.f32 %v1652_v0, %v2984_v45  ;;  %vm3309_vm11 = vcmask 1043459  }
 0x3ef   : > { %v1667_v31 = vsel %vm1664_vm10, %v1666_v3, %v1662_v1  ;;  %v1671_v9 = vsub.f32 1.0, %v1670_v4  ;;  %v1680_v11 = vand.u32 2147483648, %v3042_v32  ;;  %v1909_v12 = vrot.slane %v1638_v63, 4 }
 0x3f0   : > { %v1908_v10 = vsel %vm3309_vm11, %v1907_v5, %v1906_v2  ;;  %vm1675_vm3 = vweird.f32 %v2112_v62  ;;  %v1678_v44 = vand.u32 2147483647, %v3042_v32  ;;  %v1668_v14 = vmul.f32 %v1667_v31, %v2988_v48 }
 0x3f1   : > { %v1672_v13 = vmul.f32 %v2112_v62, %v1671_v9  ;;  %vm3310_vm12 = vcmask 1044484   ;;  %vm1674_vm2 = vweird.f32 %v3042_v32  ;;  %v1911_v17 = vrot.slane %v1653_v8, 3  ;;  %v2093_v32 = vld [vmem:[%s3243_s20] ss:$0 sm:$0xff] }
 0x3f2   : > { %v1910_v15 = vsel %vm3310_vm12, %v1909_v12, %v1908_v10  ;;  %vm1676_vm5 = vmor %vm1674_vm2, %vm1675_vm3  ;;  %v1681_v45 = vor.u32 1.1754944e-38, %v1680_v11  ;;  %vm1679_vm4 = vcmp.eq.f32.partialorder %v1678_v44, 8.507059e+37  ;;  %vm3311_vm8 = vcmask 1045509  }
 0x3f3   : > { %v1673_v16 = vadd.f32 %v2112_v62, %v1672_v13  ;;  %v1912_v19 = vsel %vm3311_vm8, %v1911_v17, %v1910_v15  ;;  %v1913_v20 = vrot.slane %v1668_v14, 2  ;;  %vm3312_vm9 = vcmask 1046534  }
 0x3f4   : > { %vm3313_vm13 = vcmask 1047559   ;;  %vm1837_vm7 = vcmask 261120   ;;  %vm1862_vm6 = vcmask 130048   ;;  %vm1920_vm3 = vcmask 654464  }
 0x3f5   : > { %v1677_v18 = vsel %vm1676_vm5, %v2112_v62, %v1673_v16  ;;  %v1914_v21 = vsel %vm3312_vm9, %v1913_v20, %v1912_v19  ;;  %vm1922_vm12 = vcmask 1048192   ;;  %v2182_v60 = vmov 0.0  }
 0x3f6   : > { %v1682_v6 = vsel %vm1679_vm4, %v1681_v45, %v1677_v18 }
 0x3f7   : > { %v1683_v7 = vmul.f32 %v1682_v6, %v3002_v58  ;;  %v2094_v58 = vld [vmem:[%s3245_s22] ss:$0 sm:$0xff] }
 0x3f9   : > { %v1915_v26 = vrot.slane %v1683_v7, 1 }
 0x3fb   : > { %v1916_v48 = vsel %vm3313_vm13, %v1915_v26, %v1914_v21 }
 0x3fc   : > { %1917 = vrot.lane.b32.xlu1 %v1916_v48, %s2181_s4  ;;  %s1939_s4 = sshll.u32 %s1935_s27, 4  ;;  %s1940_s4 = int_to_ptr.hbm [resolvable:$true] %s1939_s4 }
 0x3fd   : > { %s2131_s7 = sshra.s32 %s1940_s4, 4  ;;  %s2132_s7 = int_to_ptr.hbm [resolvable:$true] %s2131_s7 }
 0x3fe   : > { %s2133_s3 = scalar_lea.hbm %s2132_s7, 8  ;;  %p2138_p1 = scmp.lt.s32.totalorder %s2132_s7, %s3246_s23 }
 0x3ff   : > { %p2134_p12 = scmp.ne.s32.totalorder %s2132_s7, %s2133_s3  ;;  %p2139_p2 = scmp.lt.s32.totalorder %s2137_s26, %s2133_s3 }
 0x401   : > { %p2135_p13 = pnand %p2134_p12, %p2341_p5  ;;  %p2140_p3 = por %p2139_p2, %p2138_p1 }
 0x402   : > { %v1825_v27 = vpop.f32.mrf.mxu1 }
 0x403   : > { %v1826_v28 = vadd.f32 %v2093_v32, %v1825_v27  ;;  %p2136_p0 = pneg %p2135_p13 }
 0x405   : > { %v1828_v33 = vmax.f32 %v1826_v28, 0.0  ;;  %p2141_p4 = pnand %p2140_p3, %p2136_p0 }
 0x407   : > { %2040 = vmatmul.msk.f32.vlgmr.msra.gmra.mxu1 %vm1837_vm7, %v1828_v33 }
 0x46e   : > { %v1918_v43 = vpop.permute.xlu1 %1917 }
 0x484   : > { %v1858_v22 = vpop.f32.mrf.mxu1 }
 0x485   : > { %v1859_v34 = vadd.f32 %v2094_v58, %v1858_v22 }
 0x487   : > { %v1861_v35 = vmul.f32 %v1859_v34, %v1859_v34 }
 0x489   : > { %v1863_v36 = vsel %vm1862_vm6, %v1861_v35, 0.0 }
 0x48a   : > { %1864 = vadd.xlane.f32.xlu0 %v1863_v36 }
 0x4fd   : > { %v1865_v38 = vpop.xlane.xlu0 %1864 }
 0x4fe   : > { %2113 = vrsqrt.f32 %v1865_v38  ;;  %vm1873_vm14 = vcmp.eq.f32.partialorder %v1865_v38, inf  ;;  %v1876_v50 = vand.u32 2147483648, %v1865_v38  ;;  %vm1875_vm15 = vcmp.eq.f32.partialorder %v1865_v38, 0.0 }
 0x504   : > { %v2114_v29 = vpop.eup %2113 }
 0x505   : > { %v1867_v40 = vmul.f32 %v2114_v29, %v1865_v38 }
 0x507   : > { %v1868_v42 = vmul.f32 %v2114_v29, %v1867_v40 }
 0x509   : > { %v1869_v46 = vmul.f32 0.5, %v1868_v42 }
 0x50b   : > { %v1870_v23 = vsub.f32 1.5, %v1869_v46 }
 0x50d   : > { %v1871_v47 = vmul.f32 %v2114_v29, %v1870_v23 }
 0x50f   : > { %v1872_v49 = vmul.f32 %v1871_v47, %v1865_v38 }
 0x511   : > { %v1874_v30 = vsel %vm1873_vm14, %v1865_v38, %v1872_v49 }
 0x512   : > { %v1877_v37 = vsel %vm1875_vm15, %v1876_v50, %v1874_v30 }
 0x513   : > { %v1878_v51 = vmax.f32 %v1877_v37, 1e-12 }
 0x515   : > { %2115 = vrcp.f32 %v1878_v51  ;;  %v1890_v55 = vand.u32 2147483648, %v1878_v51  ;;  %v1888_v25 = vand.u32 2147483647, %v1878_v51  ;;  %vm1884_vm1 = vweird.f32 %v1878_v51 }
 0x517   : > { %v1891_v24 = vor.u32 1.1754944e-38, %v1890_v55  ;;  %vm1889_vm11 = vcmp.eq.f32.partialorder %v1888_v25, 8.507059e+37 }
 0x51b   : > { %v2116_v52 = vpop.eup %2115 }
 0x51c   : > { %v1880_v53 = vmul.f32 %v2116_v52, %v1878_v51  ;;  %vm1885_vm0 = vweird.f32 %v2116_v52 }
 0x51d   : > { %vm1886_vm10 = vmor %vm1884_vm1, %vm1885_vm0 }
 0x51e   : > { %v1881_v54 = vsub.f32 1.0, %v1880_v53 }
 0x520   : > { %v1882_v41 = vmul.f32 %v2116_v52, %v1881_v54 }
 0x522   : > { %v1883_v56 = vadd.f32 %v2116_v52, %v1882_v41 }
 0x524   : > { %v1887_v57 = vsel %vm1886_vm10, %v2116_v52, %v1883_v56 }
 0x525   : > { %v1892_v39 = vsel %vm1889_vm11, %v1891_v24, %v1887_v57 }
 0x526   : > { %v1893_v59 = vmul.f32 %v1892_v39, %v1859_v34 }
 0x528   : > { %1894 = vst.msk [vmem:[%s717_s6] sm:$0xff] %vm1862_vm6, %v1893_v59 }
 0x529   : > { %1921 = vst.msk [vmem:[%s717_s6] sm:$0xff] %vm1920_vm3, %v1918_v43 }
 0x52a   : > { %1923 = vst.msk [vmem:[%s717_s6] sm:$0xff] %vm1922_vm12, %v2182_v60 }
 0x52b   : > { %2144 = shalt.err (!%p2141_p4)
}
 0x52c   : > { %2045 = dma.vmem_to_hbm [thread:$0]  (%p2341_p5), %s1938_s5, 128, %s1940_s4, %s1925_s1  }
 0x52d PF: > { %s3315_s2 = sld [smem:[#allocation7_spill]] }
 0x52e   : > { %s3316_s6 = sld [smem:[#allocation5_spill]] }
 0x533   : > { %p2051_p7 = scmp.ge.s32.totalorder %s3315_s2, 2 }
 0x534   : > { %s1951_s9 = sand.u32 1, %s3316_s6  }
 0x535   : > { %p2048_p8 = pnand %p2051_p7, %p2345_p6  ;;  %s1952_s0 = scalar_lea.sflag [#allocation3], %s1951_s9 }
 0x537   : > { %p2049_p9 = pneg %p2048_p8 }
 0x539   : > { %2162 = dma.done.wait (%p2049_p9), %s1952_s0, 128  }
 0x53a   : > { %2164 = vsyncadd (%p2049_p9), %s1952_s0, 4294967168  ;;  %s3318_s25 = sld [smem:[#allocation8_spill]]  ;;  %s3321_s4 = smov %s2171_s30 }
 0x53b   : > { %s3319_s7 = sld [smem:[#allocation6_spill]] }
 0x53c   : > { %s3320_s24 = sld [smem:[#allocation9_spill]] }
 0x540   : > { %p33_p10 = scmp.ge.s32.totalorder %s3318_s25, 6  }
 0x541   : > { %s3322_s30 = smov %s3319_s7 }
 0x542   :  { %35 = sbr.rel (!%p33_p10) target bundleno = 14 (0xe), region = 150 }
 0x547   :  { %1958 = vsyncpa [#allocation3], 1 }
 0x548   :  { %1960 = vsyncpa [#allocation3 + $0x1], 1 }

</bundles_post_ra>
